<compile_context>
chip_gen: v7x
topology: tpu7x:2x2x1
jax: 0.10.0
libtpu: 0.0.40
codegen_flags: <defaults>
</compile_context>

<pallas_src>
import jax
import jax.numpy as jnp
from jax.experimental import pallas as pl
from jax.experimental.pallas import tpu as pltpu

LAT_PAD = 128           # latent dim padded to one full lane group
MAX_TILE_B = 256        # batch-tile cap (sublane-aligned, fills MXU rows)


def _round_up(x, m):
    return ((x + m - 1) // m) * m


def _vmem_cap_bytes():
    """Per-core VMEM capacity; conservative fallback assumes v7x (64 MiB per TC)."""
    try:
        return int(pltpu.get_tpu_info().vmem_capacity_bytes)
    except Exception:
        return 64 << 20


# ---------------------------------------------------------------------------
# Path A (fused): weights fully VMEM-resident (single-buffered), grid over batch.
# ---------------------------------------------------------------------------
def _fused_kernel(x_ref, we_ref, be_ref, wml_ref, bml_ref, eps_ref,
                  wd1_ref, bd1_ref, wd2_ref, bd2_ref, xhat_ref):
    # ---- vencoder ----
    h = jnp.dot(x_ref[...], we_ref[...],
                preferred_element_type=jnp.float32) + be_ref[...]
    h = jnp.maximum(h, 0.0).astype(jnp.bfloat16)                       # [TB, HID]

    # fused mu|logvar projection; lane-aligned halves of width LAT_PAD each
    mulv = jnp.dot(h, wml_ref[...],
                   preferred_element_type=jnp.float32) + bml_ref[...]
    lp = eps_ref.shape[-1]
    mu, logvar = mulv[:, :lp], mulv[:, lp:]
    # reparameterization (padded lanes: mu=0, sigma=1, eps=0 -> z=0)
    z = (mu + jnp.exp(0.5 * logvar) * eps_ref[...]).astype(jnp.bfloat16)

    # ---- decoder ----
    h2 = jnp.dot(z, wd1_ref[...],
                 preferred_element_type=jnp.float32) + bd1_ref[...]
    h2 = jnp.maximum(h2, 0.0).astype(jnp.bfloat16)

    logits = jnp.dot(h2, wd2_ref[...],
                     preferred_element_type=jnp.float32) + bd2_ref[...]
    xhat_ref[...] = jax.nn.sigmoid(logits.astype(jnp.bfloat16)).astype(xhat_ref.dtype)


# ---------------------------------------------------------------------------
# Path B (D-tiled, v7x / large models): grid = (batch, phase, d_block).
#   phase 0: K-reduction of x @ We over D blocks into a resident f32 accumulator;
#            at the last D block compute z and the decoder hidden h2 (VMEM scratch).
#   phase 1: N-split of the output projection; each D block writes one disjoint
#            (TILE_B, D_TILE) slab of x_hat.
# ---------------------------------------------------------------------------
def _d_tiled_kernel(x_ref, we_ref, be_ref, wml_ref, bml_ref, eps_ref,
                    wd1_ref, bd1_ref, wd2_ref, bd2_ref, xhat_ref,
                    acc_ref, h2_ref):
    p = pl.program_id(1)
    j = pl.program_id(2)
    nd = pl.num_programs(2)

    @pl.when((p == 0) & (j == 0))
    def _():
        acc_ref[...] = jnp.zeros_like(acc_ref)

    @pl.when(p == 0)
    def _():
        acc_ref[...] += jnp.dot(x_ref[...], we_ref[...],
                                preferred_element_type=jnp.float32)

    @pl.when((p == 0) & (j == nd - 1))
    def _():
        h = jnp.maximum(acc_ref[...] + be_ref[...], 0.0).astype(jnp.bfloat16)
        mulv = jnp.dot(h, wml_ref[...],
                       preferred_element_type=jnp.float32) + bml_ref[...]
        lp = eps_ref.shape[-1]
        mu, logvar = mulv[:, :lp], mulv[:, lp:]
        z = (mu + jnp.exp(0.5 * logvar) * eps_ref[...]).astype(jnp.bfloat16)
        h2 = jnp.dot(z, wd1_ref[...],
                     preferred_element_type=jnp.float32) + bd1_ref[...]
        h2_ref[...] = jnp.maximum(h2, 0.0).astype(jnp.bfloat16)

    @pl.when(p == 1)
    def _():
        logits = jnp.dot(h2_ref[...], wd2_ref[...],
                         preferred_element_type=jnp.float32) + bd2_ref[...]
        xhat_ref[...] = jax.nn.sigmoid(
            logits.astype(jnp.bfloat16)).astype(xhat_ref.dtype)


# ---------------------------------------------------------------------------
# Wrapper
# ---------------------------------------------------------------------------
def lagging_vae_forward(x_nchw, params, eps, *, mode="auto", tile_b=None,
                        d_tile=None, upcast_output=False):
    """x_nchw: [B, C, H, W] f32, eps: [B, LAT] f32. Returns [B, C, H, W] bf16
    (f32 if upcast_output)."""
    assert mode in ("auto", "fused", "d_tiled")
    B, C, H, W = x_nchw.shape
    D = C * H * W
    HID = params["We"].shape[1]
    LAT = params["Wmu"].shape[1]
    assert LAT <= LAT_PAD

    # Adaptive batch tile: round B to the bf16 sublane quantum (16), cap large.
    if tile_b is None:
        tile_b = min(_round_up(B, 16), MAX_TILE_B)
    B_pad = _round_up(B, tile_b)

    x_flat = x_nchw.reshape(B, D).astype(jnp.bfloat16)
    eps_p = jnp.pad(eps.astype(jnp.float32), ((0, 0), (0, LAT_PAD - LAT)))
    if B_pad != B:
        x_flat = jnp.pad(x_flat, ((0, B_pad - B), (0, 0)))
        eps_p = jnp.pad(eps_p, ((0, B_pad - B), (0, 0)))

    def pad_cols(w, n):
        return jnp.pad(w, ((0, 0), (0, n - w.shape[1])))

    # Fused + padded weights: mu|logvar as one lane-dense matmul; padded
    # lanes/rows are zero so the math matches the unpadded model exactly.
    w_mulv = jnp.concatenate(
        [pad_cols(params["Wmu"], LAT_PAD), pad_cols(params["Wlv"], LAT_PAD)],
        axis=1).astype(jnp.bfloat16)                         # [HID, 2*LAT_PAD]
    b_mulv = jnp.concatenate(
        [pad_cols(params["bmu"], LAT_PAD), pad_cols(params["blv"], LAT_PAD)],
        axis=1).astype(jnp.float32)                          # [1, 2*LAT_PAD]
    wd1 = jnp.pad(params["Wd1"],
                  ((0, LAT_PAD - LAT), (0, 0))).astype(jnp.bfloat16)

    we = params["We"].astype(jnp.bfloat16)
    wd2 = params["Wd2"].astype(jnp.bfloat16)
    be = params["be"].astype(jnp.float32)
    bd1 = params["bd1"].astype(jnp.float32)
    bd2 = params["bd2"].astype(jnp.float32)

    cap = _vmem_cap_bytes()
    budget = int(0.70 * cap)

    # --- VMEM footprint estimates (bytes) ---
    small_resident = ((w_mulv.size + wd1.size) * 2
                      + (be.size + b_mulv.size + bd1.size) * 4
                      + 2 * tile_b * LAT_PAD * 4)            # eps (double-buffered)
    hid_temps = 2 * tile_b * HID * 4 + tile_b * 2 * LAT_PAD * 4

    def fused_footprint():
        weights = (we.size + wd2.size) * 2 + bd2.size * 4    # single-buffered
        stream = 2 * 2 * tile_b * D * 2                      # x + x_hat tiles, 2-buf bf16
        temps = tile_b * D * 4 + hid_temps                   # f32 logits + hidden temps
        return weights + small_resident + stream + temps

    def d_tiled_footprint(dt):
        blocks = 2 * 2 * dt * HID * 2 + 2 * dt * 4           # We/Wd2 blocks + bd2, 2-buf
        stream = 2 * 2 * tile_b * dt * 2                     # x + x_hat blocks
        scratch = tile_b * HID * (4 + 2)                     # f32 acc + bf16 h2
        temps = tile_b * dt * 4 + hid_temps
        return blocks + small_resident + stream + scratch + temps

    use_fused = (mode == "fused") or (mode == "auto" and fused_footprint() <= budget)

    rep1 = dict(pipeline_mode=pl.Buffered(1))   # never re-DMA'd -> single VMEM copy

    if use_fused:
        n_b = B_pad // tile_b
        grid = (n_b,)
        row = lambda i: (i, 0)
        rep = lambda i: (0, 0)
        in_specs = [
            pl.BlockSpec((tile_b, D), row),                          # x
            pl.BlockSpec((D, HID), rep, **rep1),                     # We
            pl.BlockSpec((1, HID), rep, **rep1),                     # be
            pl.BlockSpec((HID, 2 * LAT_PAD), rep, **rep1),           # W_mu|logvar
            pl.BlockSpec((1, 2 * LAT_PAD), rep, **rep1),             # b_mu|logvar
            pl.BlockSpec((tile_b, LAT_PAD), row),                    # eps
            pl.BlockSpec((LAT_PAD, HID), rep, **rep1),               # Wd1
            pl.BlockSpec((1, HID), rep, **rep1),                     # bd1
            pl.BlockSpec((HID, D), rep, **rep1),                     # Wd2
            pl.BlockSpec((1, D), rep, **rep1),                       # bd2
        ]
        out_specs = pl.BlockSpec((tile_b, D), row)
        scratch_shapes = ()
        kernel = _fused_kernel
        footprint = fused_footprint()
        # Few batch tiles (latency-bound): don't duplicate resident weights per TC.
        dims = ("parallel",) if n_b >= 4 else ("arbitrary",)
        D_pad = D
    else:
        if d_tile is None:
            d_tile = 128
            for cand in (512, 256, 128):
                if cand <= _round_up(D, 128) and d_tiled_footprint(cand) <= budget:
                    d_tile = cand
                    break
        # TODO(synk): if (d_tile, HID) weight blocks still overflow VMEM for very
        # large HID, add an HID grid axis as well.
        D_pad = _round_up(D, d_tile)
        if D_pad != D:
            x_flat = jnp.pad(x_flat, ((0, 0), (0, D_pad - D)))
            we = jnp.pad(we, ((0, D_pad - D), (0, 0)))
            wd2 = jnp.pad(wd2, ((0, 0), (0, D_pad - D)))
            bd2 = jnp.pad(bd2, ((0, 0), (0, D_pad - D)))
        n_b = B_pad // tile_b
        n_d = D_pad // d_tile
        grid = (n_b, 2, n_d)
        rep = lambda i, p, j: (0, 0)
        in_specs = [
            pl.BlockSpec((tile_b, d_tile), lambda i, p, j: (i, j * (1 - p))),  # x
            pl.BlockSpec((d_tile, HID), lambda i, p, j: (j * (1 - p), 0)),     # We
            pl.BlockSpec((1, HID), rep, **rep1),                               # be
            pl.BlockSpec((HID, 2 * LAT_PAD), rep, **rep1),                     # W_mu|lv
            pl.BlockSpec((1, 2 * LAT_PAD), rep, **rep1),                       # b_mu|lv
            pl.BlockSpec((tile_b, LAT_PAD), lambda i, p, j: (i, 0)),           # eps
            pl.BlockSpec((LAT_PAD, HID), rep, **rep1),                         # Wd1
            pl.BlockSpec((1, HID), rep, **rep1),                               # bd1
            pl.BlockSpec((HID, d_tile), lambda i, p, j: (0, j * p)),           # Wd2
            pl.BlockSpec((1, d_tile), lambda i, p, j: (0, j * p)),             # bd2
        ]
        out_specs = pl.BlockSpec((tile_b, d_tile), lambda i, p, j: (i, j * p))
        scratch_shapes = (
            pltpu.VMEM((tile_b, HID), jnp.float32),    # encoder f32 accumulator
            pltpu.VMEM((tile_b, HID), jnp.bfloat16),   # decoder hidden h2
        )
        kernel = _d_tiled_kernel
        footprint = d_tiled_footprint(d_tile)
        batch_sem = "parallel" if n_b >= 4 else "arbitrary"
        dims = (batch_sem, "arbitrary", "arbitrary")

    # Footprint-derived VMEM request; never ask for all of a v7x core's 64 MiB.
    vmem_limit = int(min(max(int(footprint * 1.25), 32 << 20), int(0.85 * cap)))

    x_hat = pl.pallas_call(
        kernel,
        out_shape=jax.ShapeDtypeStruct((B_pad, D_pad), jnp.bfloat16),
        grid=grid,
        in_specs=in_specs,
        out_specs=out_specs,
        scratch_shapes=scratch_shapes,
        compiler_params=pltpu.CompilerParams(
            dimension_semantics=dims,
            vmem_limit_bytes=vmem_limit,
        ),
    )(x_flat, we, be, w_mulv, b_mulv, eps_p, wd1, bd1, wd2, bd2)

    x_hat = x_hat[:B, :D].reshape(B, C, H, W)
    if upcast_output:
        x_hat = x_hat.astype(jnp.float32)
    return x_hat


def init_params(key, d_in, d_hidden, d_latent):
    ks = jax.random.split(key, 6)
    s = 0.02
    return {
        "We":  jax.random.normal(ks[0], (d_in, d_hidden), jnp.float32) * s,
        "be":  jnp.zeros((1, d_hidden), jnp.float32),
        "Wmu": jax.random.normal(ks[1], (d_hidden, d_latent), jnp.float32) * s,
        "bmu": jnp.zeros((1, d_latent), jnp.float32),
        "Wlv": jax.random.normal(ks[2], (d_hidden, d_latent), jnp.float32) * s,
        "blv": jnp.zeros((1, d_latent), jnp.float32),
        "Wd1": jax.random.normal(ks[3], (d_latent, d_hidden), jnp.float32) * s,
        "bd1": jnp.zeros((1, d_hidden), jnp.float32),
        "Wd2": jax.random.normal(ks[4], (d_hidden, d_in), jnp.float32) * s,
        "bd2": jnp.zeros((1, d_in), jnp.float32),
    }


if __name__ == "__main__":
    # Small image-VAE shapes: x is NCHW.
    B, C, H, W = 2, 4, 16, 16
    D = C * H * W            # 1024
    HID = 128                # hidden width (lane-aligned)
    LAT = 32                 # latent dim (padded to 128 lanes inside the wrapper)

    key = jax.random.PRNGKey(0)
    k_x, k_eps, k_p, k_x2, k_e2 = jax.random.split(key, 5)

    x = jax.random.uniform(k_x, (B, C, H, W), jnp.float32)
    eps = jax.random.normal(k_eps, (B, LAT), jnp.float32)
    params = init_params(k_p, D, HID, LAT)

    # Pure-JAX reference mirroring the kernel's bf16 weights / f32 accumulation.
    def ref_forward(xf, epsf):
        bf = jnp.bfloat16
        h = jnp.maximum(
            jnp.dot(xf.astype(bf), params["We"].astype(bf),
                    preferred_element_type=jnp.float32) + params["be"], 0.0).astype(bf)
        mu = jnp.dot(h, params["Wmu"].astype(bf),
                     preferred_element_type=jnp.float32) + params["bmu"]
        logvar = jnp.dot(h, params["Wlv"].astype(bf),
                         preferred_element_type=jnp.float32) + params["blv"]
        z = (mu + jnp.exp(0.5 * logvar) * epsf).astype(bf)
        h2 = jnp.maximum(
            jnp.dot(z, params["Wd1"].astype(bf),
                    preferred_element_type=jnp.float32) + params["bd1"], 0.0).astype(bf)
        logits = jnp.dot(h2, params["Wd2"].astype(bf),
                         preferred_element_type=jnp.float32) + params["bd2"]
        return jax.nn.sigmoid(logits.astype(bf)).astype(jnp.float32)

    # --- Path A: fused, weights VMEM-resident (auto-selected at these sizes) ---
    x_hat = lagging_vae_forward(x, params, eps)
    jax.block_until_ready(x_hat)
    assert x_hat.shape == (B, C, H, W)
    assert x_hat.dtype == jnp.bfloat16

    ref = ref_forward(x.reshape(B, D), eps).reshape(B, C, H, W)
    err = float(jnp.max(jnp.abs(x_hat.astype(jnp.float32) - ref)))
    assert err < 8e-3, err

    # --- Path B: D-tiled (v7x / large-model) path, forced on a small problem ---
    B2 = 40
    x2 = jax.random.uniform(k_x2, (B2, C, H, W), jnp.float32)
    eps2 = jax.random.normal(k_e2, (B2, LAT), jnp.float32)
    x_hat2 = lagging_vae_forward(x2, params, eps2, mode="d_tiled",
                                 tile_b=16, d_tile=256)
    jax.block_until_ready(x_hat2)
    assert x_hat2.shape == (B2, C, H, W)

    ref2 = ref_forward(x2.reshape(B2, D), eps2).reshape(B2, C, H, W)
    err2 = float(jnp.max(jnp.abs(x_hat2.astype(jnp.float32) - ref2)))
    assert err2 < 8e-3, err2

    print("KERNEL_OK")
</pallas_src>

<mosaic_0001>
module attributes {stable_mosaic.version = 11 : i64} {
  func.func @_fused_kernel(%arg0: i32, %arg1: memref<16x1024xbf16, #tpu.memory_space<vmem>>, %arg2: memref<1024x128xbf16, #tpu.memory_space<vmem>>, %arg3: memref<1x128xf32, #tpu.memory_space<vmem>>, %arg4: memref<128x256xbf16, #tpu.memory_space<vmem>>, %arg5: memref<1x256xf32, #tpu.memory_space<vmem>>, %arg6: memref<16x128xf32, #tpu.memory_space<vmem>>, %arg7: memref<128x128xbf16, #tpu.memory_space<vmem>>, %arg8: memref<1x128xf32, #tpu.memory_space<vmem>>, %arg9: memref<128x1024xbf16, #tpu.memory_space<vmem>>, %arg10: memref<1x1024xf32, #tpu.memory_space<vmem>>, %arg11: memref<16x1024xbf16, #tpu.memory_space<vmem>>) attributes {dimension_semantics = [#tpu.dimension_semantics<arbitrary>], iteration_bounds = array<i64: 1>, scalar_prefetch = 0 : i64, scratch_operands = 0 : i64, tpu.core_type = #tpu.core_type<tc>, window_params = [{transform_indices = @transform_0, window_bounds = array<i64: 16, 1024>}, {pipeline_mode = #tpu.pipeline_mode<synchronous>, transform_indices = @transform_1, window_bounds = array<i64: 1024, 128>}, {pipeline_mode = #tpu.pipeline_mode<synchronous>, transform_indices = @transform_2, window_bounds = array<i64: 1, 128>}, {pipeline_mode = #tpu.pipeline_mode<synchronous>, transform_indices = @transform_3, window_bounds = array<i64: 128, 256>}, {pipeline_mode = #tpu.pipeline_mode<synchronous>, transform_indices = @transform_4, window_bounds = array<i64: 1, 256>}, {transform_indices = @transform_5, window_bounds = array<i64: 16, 128>}, {pipeline_mode = #tpu.pipeline_mode<synchronous>, transform_indices = @transform_6, window_bounds = array<i64: 128, 128>}, {pipeline_mode = #tpu.pipeline_mode<synchronous>, transform_indices = @transform_7, window_bounds = array<i64: 1, 128>}, {pipeline_mode = #tpu.pipeline_mode<synchronous>, transform_indices = @transform_8, window_bounds = array<i64: 128, 1024>}, {pipeline_mode = #tpu.pipeline_mode<synchronous>, transform_indices = @transform_9, window_bounds = array<i64: 1, 1024>}, {transform_indices = @transform_10, window_bounds = array<i64: 16, 1024>}]} {
    %c0 = arith.constant 0 : index
    %c0_0 = arith.constant 0 : index
    %0 = vector.load %arg1[%c0, %c0_0] : memref<16x1024xbf16, #tpu.memory_space<vmem>>, vector<16x1024xbf16>
    %c0_1 = arith.constant 0 : index
    %c0_2 = arith.constant 0 : index
    %1 = vector.load %arg2[%c0_1, %c0_2] : memref<1024x128xbf16, #tpu.memory_space<vmem>>, vector<1024x128xbf16>
    %cst = arith.constant dense<0.000000e+00> : vector<16x128xf32>
    %2 = tpu.matmul %0, %1, %cst {dimension_numbers = #tpu.dot_dimension_numbers<[1], [0], [0], [1], [0, 0, 1, 1], [], []>} : vector<16x1024xbf16>, vector<1024x128xbf16>, vector<16x128xf32> -> vector<16x128xf32>
    %c0_3 = arith.constant 0 : index
    %c0_4 = arith.constant 0 : index
    %3 = vector.load %arg3[%c0_3, %c0_4] : memref<1x128xf32, #tpu.memory_space<vmem>>, vector<1x128xf32>
    %4 = vector.broadcast %3 : vector<1x128xf32> to vector<16x128xf32>
    %5 = arith.addf %2, %4 : vector<16x128xf32>
    %cst_5 = arith.constant 0.000000e+00 : f32
    %6 = vector.broadcast %cst_5 : f32 to vector<16x128xf32>
    %7 = arith.maximumf %5, %6 : vector<16x128xf32>
    %8 = arith.truncf %7 : vector<16x128xf32> to vector<16x128xbf16>
    %c0_6 = arith.constant 0 : index
    %c0_7 = arith.constant 0 : index
    %9 = vector.load %arg4[%c0_6, %c0_7] : memref<128x256xbf16, #tpu.memory_space<vmem>>, vector<128x256xbf16>
    %cst_8 = arith.constant dense<0.000000e+00> : vector<16x256xf32>
    %10 = tpu.matmul %8, %9, %cst_8 {dimension_numbers = #tpu.dot_dimension_numbers<[1], [0], [0], [1], [0, 0, 1, 1], [], []>} : vector<16x128xbf16>, vector<128x256xbf16>, vector<16x256xf32> -> vector<16x256xf32>
    %c0_9 = arith.constant 0 : index
    %c0_10 = arith.constant 0 : index
    %11 = vector.load %arg5[%c0_9, %c0_10] : memref<1x256xf32, #tpu.memory_space<vmem>>, vector<1x256xf32>
    %12 = vector.broadcast %11 : vector<1x256xf32> to vector<16x256xf32>
    %13 = arith.addf %10, %12 : vector<16x256xf32>
    %14 = vector.extract_strided_slice %13 {offsets = [0, 0], sizes = [16, 128], strides = [1, 1]} : vector<16x256xf32> to vector<16x128xf32>
    %15 = vector.extract_strided_slice %13 {offsets = [0, 128], sizes = [16, 128], strides = [1, 1]} : vector<16x256xf32> to vector<16x128xf32>
    %cst_11 = arith.constant 5.000000e-01 : f32
    %16 = vector.broadcast %cst_11 : f32 to vector<16x128xf32>
    %17 = arith.mulf %16, %15 : vector<16x128xf32>
    %18 = math.exp %17 : vector<16x128xf32>
    %c0_12 = arith.constant 0 : index
    %c0_13 = arith.constant 0 : index
    %19 = vector.load %arg6[%c0_12, %c0_13] : memref<16x128xf32, #tpu.memory_space<vmem>>, vector<16x128xf32>
    %20 = arith.mulf %18, %19 : vector<16x128xf32>
    %21 = arith.addf %14, %20 : vector<16x128xf32>
    %22 = arith.truncf %21 : vector<16x128xf32> to vector<16x128xbf16>
    %c0_14 = arith.constant 0 : index
    %c0_15 = arith.constant 0 : index
    %23 = vector.load %arg7[%c0_14, %c0_15] : memref<128x128xbf16, #tpu.memory_space<vmem>>, vector<128x128xbf16>
    %cst_16 = arith.constant dense<0.000000e+00> : vector<16x128xf32>
    %24 = tpu.matmul %22, %23, %cst_16 {dimension_numbers = #tpu.dot_dimension_numbers<[1], [0], [0], [1], [0, 0, 1, 1], [], []>} : vector<16x128xbf16>, vector<128x128xbf16>, vector<16x128xf32> -> vector<16x128xf32>
    %c0_17 = arith.constant 0 : index
    %c0_18 = arith.constant 0 : index
    %25 = vector.load %arg8[%c0_17, %c0_18] : memref<1x128xf32, #tpu.memory_space<vmem>>, vector<1x128xf32>
    %26 = vector.broadcast %25 : vector<1x128xf32> to vector<16x128xf32>
    %27 = arith.addf %24, %26 : vector<16x128xf32>
    %cst_19 = arith.constant 0.000000e+00 : f32
    %28 = vector.broadcast %cst_19 : f32 to vector<16x128xf32>
    %29 = arith.maximumf %27, %28 : vector<16x128xf32>
    %30 = arith.truncf %29 : vector<16x128xf32> to vector<16x128xbf16>
    %c0_20 = arith.constant 0 : index
    %c0_21 = arith.constant 0 : index
    %31 = vector.load %arg9[%c0_20, %c0_21] : memref<128x1024xbf16, #tpu.memory_space<vmem>>, vector<128x1024xbf16>
    %cst_22 = arith.constant dense<0.000000e+00> : vector<16x1024xf32>
    %32 = tpu.matmul %30, %31, %cst_22 {dimension_numbers = #tpu.dot_dimension_numbers<[1], [0], [0], [1], [0, 0, 1, 1], [], []>} : vector<16x128xbf16>, vector<128x1024xbf16>, vector<16x1024xf32> -> vector<16x1024xf32>
    %c0_23 = arith.constant 0 : index
    %c0_24 = arith.constant 0 : index
    %33 = vector.load %arg10[%c0_23, %c0_24] : memref<1x1024xf32, #tpu.memory_space<vmem>>, vector<1x1024xf32>
    %34 = vector.broadcast %33 : vector<1x1024xf32> to vector<16x1024xf32>
    %35 = arith.addf %32, %34 : vector<16x1024xf32>
    %36 = arith.truncf %35 : vector<16x1024xf32> to vector<16x1024xbf16>
    %37 = arith.negf %36 : vector<16x1024xbf16>
    %38 = math.exp %37 : vector<16x1024xbf16>
    %cst_25 = arith.constant 1.000000e+00 : bf16
    %39 = vector.broadcast %cst_25 : bf16 to vector<16x1024xbf16>
    %40 = arith.addf %39, %38 : vector<16x1024xbf16>
    %41 = arith.divf %39, %40 : vector<16x1024xbf16>
    %c0_26 = arith.constant 0 : index
    %c0_27 = arith.constant 0 : index
    %42 = vector.load %arg11[%c0_26, %c0_27] : memref<16x1024xbf16, #tpu.memory_space<vmem>>, vector<16x1024xbf16>
    tpu.vector_store %arg11[%c0_26, %c0_27], %41 {strides = array<i32>} : memref<16x1024xbf16, #tpu.memory_space<vmem>>, vector<16x1024xbf16>,
    return
  }
  func.func @transform_0(%arg0: i32) -> (i32, i32) {
    %c0_i32 = arith.constant 0 : i32
    %c0_i32_0 = arith.constant 0 : i32
    return %arg0, %c0_i32 : i32, i32
  }
  func.func @transform_1(%arg0: i32) -> (i32, i32) {
    %c0_i32 = arith.constant 0 : i32
    %c0_i32_0 = arith.constant 0 : i32
    %c0_i32_1 = arith.constant 0 : i32
    return %c0_i32, %c0_i32_0 : i32, i32
  }
  func.func @transform_2(%arg0: i32) -> (i32, i32) {
    %c0_i32 = arith.constant 0 : i32
    %c0_i32_0 = arith.constant 0 : i32
    %c0_i32_1 = arith.constant 0 : i32
    return %c0_i32, %c0_i32_0 : i32, i32
  }
  func.func @transform_3(%arg0: i32) -> (i32, i32) {
    %c0_i32 = arith.constant 0 : i32
    %c0_i32_0 = arith.constant 0 : i32
    %c0_i32_1 = arith.constant 0 : i32
    return %c0_i32, %c0_i32_0 : i32, i32
  }
  func.func @transform_4(%arg0: i32) -> (i32, i32) {
    %c0_i32 = arith.constant 0 : i32
    %c0_i32_0 = arith.constant 0 : i32
    %c0_i32_1 = arith.constant 0 : i32
    return %c0_i32, %c0_i32_0 : i32, i32
  }
  func.func @transform_5(%arg0: i32) -> (i32, i32) {
    %c0_i32 = arith.constant 0 : i32
    %c0_i32_0 = arith.constant 0 : i32
    return %arg0, %c0_i32 : i32, i32
  }
  func.func @transform_6(%arg0: i32) -> (i32, i32) {
    %c0_i32 = arith.constant 0 : i32
    %c0_i32_0 = arith.constant 0 : i32
    %c0_i32_1 = arith.constant 0 : i32
    return %c0_i32, %c0_i32_0 : i32, i32
  }
  func.func @transform_7(%arg0: i32) -> (i32, i32) {
    %c0_i32 = arith.constant 0 : i32
    %c0_i32_0 = arith.constant 0 : i32
    %c0_i32_1 = arith.constant 0 : i32
    return %c0_i32, %c0_i32_0 : i32, i32
  }
  func.func @transform_8(%arg0: i32) -> (i32, i32) {
    %c0_i32 = arith.constant 0 : i32
    %c0_i32_0 = arith.constant 0 : i32
    %c0_i32_1 = arith.constant 0 : i32
    return %c0_i32, %c0_i32_0 : i32, i32
  }
  func.func @transform_9(%arg0: i32) -> (i32, i32) {
    %c0_i32 = arith.constant 0 : i32
    %c0_i32_0 = arith.constant 0 : i32
    %c0_i32_1 = arith.constant 0 : i32
    return %c0_i32, %c0_i32_0 : i32, i32
  }
  func.func @transform_10(%arg0: i32) -> (i32, i32) {
    %c0_i32 = arith.constant 0 : i32
    %c0_i32_0 = arith.constant 0 : i32
    return %arg0, %c0_i32 : i32, i32
  }
}

</mosaic_0001>

<bundles_post_ra>
// kernel: tpu_custom_call.1
= control target key start
LH: loop header
LB: loop body
LE: loop exit
PB: predicated region body
PF: predicated region fallthrough
CT: control target
= control target key end

     0   :  { %15 = vsyncpa [#allocation3], 0  ;;  %s2751_s0 = inlined_call_operand.hbm [shape: bf16[16,1024], index: 0, kind: input, shape index: {}]   ;;  %s2752_s1 = inlined_call_operand.hbm [shape: bf16[1024,128], index: 1, kind: input, shape index: {}]   ;;  %s2753_s2 = inlined_call_operand.hbm [shape: f32[1,128], index: 2, kind: input, shape index: {}]   ;;  %s2754_s3 = inlined_call_operand.hbm [shape: bf16[128,256], index: 3, kind: input, shape index: {}]   ;;  %s2755_s4 = inlined_call_operand.vmem [shape: f32[1,256], index: 4, kind: input, shape index: {}]   ;;  %s2756_s5 = inlined_call_operand.vmem [shape: f32[16,128], index: 5, kind: input, shape index: {}]   ;;  %s2757_s6 = inlined_call_operand.hbm [shape: bf16[128,128], index: 6, kind: input, shape index: {}]   ;;  %s2758_s7 = inlined_call_operand.hbm [shape: f32[1,128], index: 7, kind: input, shape index: {}]   ;;  %s2759_s8 = inlined_call_operand.hbm [shape: bf16[128,1024], index: 8, kind: input, shape index: {}]   ;;  %s2760_s9 = inlined_call_operand.vmem [shape: f32[1,1024], index: 9, kind: input, shape index: {}]   ;;  %s2761_s10 = inlined_call_operand.hbm [shape: bf16[16,1024], index: 10, kind: output, shape index: {}]  }
   0x1   :  { %16 = vsyncpa [#allocation6], 0 }
   0x2   :  { %17 = vsyncpa [#allocation9], 0 }
   0x3   :  { %18 = vsyncpa [#allocation12], 0 }
   0x4   :  { %19 = vsyncpa [#allocation4], 0  ;;  %s2502_s13 = smov [#allocation5]   ;;  %s2316_s17 = scalar_lea.hbm %s2752_s1, 8192 }
   0x5   :  { %s37_s14 = sshll.u32 %s2502_s13, 4  ;;  %p2317_p0 = scmp.ne.s32.totalorder %s2752_s1, %s2316_s17  ;;  %s38_s14 = int_to_ptr.vmem [resolvable:$true] %s37_s14 }
   0x6   :  { %p2320_p1 = scmp.lt.u32.totalorder %s2316_s17, %s2752_s1 }
   0x8   :  { %p2322_p2 = pnand %p2320_p1, %p2317_p0 }
   0xa   :  { %2325 = shalt.err (!%p2322_p2)
}
   0xb   :  { %s2326_s22 = scalar_lea.vmem %s38_s14, 8192  ;;  %p2331_p4 = scmp.lt.s32.totalorder %s38_s14, %s38_s14 }
   0xc   :  { %p2327_p3 = scmp.ne.s32.totalorder %s38_s14, %s2326_s22  ;;  %p2332_p5 = scmp.lt.s32.totalorder %s2326_s22, %s2326_s22 }
   0xe   :  { %p2333_p6 = por %p2332_p5, %p2331_p4 }
  0x10   :  { %p2334_p7 = pnand %p2333_p6, %p2327_p3 }
  0x12   :  { %2337 = shalt.err (!%p2334_p7)
}
  0x13   :  { %s2503_s23 = smov 64   ;;  %s2504_s24 = smov 4  }
  0x14   :  { %43 = dma.hbm_to_vmem [thread:$0]  %s2752_s1, 8192, %s38_s14, [#allocation6], %s2503_s23, %s2503_s23, %s2504_s24  }
  0x15   :  { %s2505_s27 = smov [#allocation8]   ;;  %s2338_s11 = scalar_lea.hbm %s2754_s3, 2048 }
  0x16   :  { %s59_s28 = sshll.u32 %s2505_s27, 4  ;;  %p2339_p8 = scmp.ne.s32.totalorder %s2754_s3, %s2338_s11  ;;  %s60_s28 = int_to_ptr.vmem [resolvable:$true] %s59_s28 }
  0x17   :  { %p2342_p9 = scmp.lt.u32.totalorder %s2338_s11, %s2754_s3 }
  0x19   :  { %p2344_p10 = pnand %p2342_p9, %p2339_p8 }
  0x1b   :  { %2347 = shalt.err (!%p2344_p10)
}
  0x1c   :  { %s2348_s17 = scalar_lea.vmem %s60_s28, 2048  ;;  %p2353_p12 = scmp.lt.s32.totalorder %s60_s28, %s60_s28 }
  0x1d   :  { %p2349_p11 = scmp.ne.s32.totalorder %s60_s28, %s2348_s17  ;;  %p2354_p13 = scmp.lt.s32.totalorder %s2348_s17, %s2348_s17 }
  0x1f   :  { %p2355_p0 = por %p2354_p13, %p2353_p12 }
  0x21   :  { %p2356_p1 = pnand %p2355_p0, %p2349_p11 }
  0x23   :  { %2359 = shalt.err (!%p2356_p1)
}
  0x24   :  { %s2506_s1 = smov 128   ;;  %s2507_s14 = smov 8  }
  0x25   :  { %65 = dma.hbm_to_vmem [thread:$0]  %s2754_s3, 2048, %s60_s28, [#allocation9], %s2506_s1, %s2506_s1, %s2507_s14  }
  0x26   :  { %s2508_s20 = smov [#allocation11]   ;;  %s2509_s22 = smov [#allocation2]  }
  0x27   :  { %s88_s21 = sshll.u32 %s2508_s20, 4  ;;  %s25_s25 = sshll.u32 %s2509_s22, 4  ;;  %s89_s21 = int_to_ptr.vmem [resolvable:$true] %s88_s21  ;;  %s2601_s25 = int_to_ptr.vmem [resolvable:$true] %s25_s25 }
  0x28   :  { %s2360_s29 = scalar_lea.hbm %s2758_s7, 16 }
  0x29   :  { %p2361_p2 = scmp.ne.s32.totalorder %s2758_s7, %s2360_s29  ;;  %p2364_p3 = scmp.lt.u32.totalorder %s2360_s29, %s2758_s7 }
  0x2b   :  { %p2366_p4 = pnand %p2364_p3, %p2361_p2 }
  0x2d   :  { %2369 = shalt.err (!%p2366_p4)
}
  0x2e   :  { %s2370_s3 = scalar_lea.vmem %s89_s21, 16  ;;  %s2374_s28 = scalar_lea.vmem %s89_s21, 32 }
  0x2f   :  { %p2371_p5 = scmp.ne.s32.totalorder %s89_s21, %s2370_s3  ;;  %p2375_p6 = scmp.lt.s32.totalorder %s89_s21, %s89_s21 }
  0x30   :  { %p2376_p7 = scmp.lt.s32.totalorder %s2374_s28, %s2370_s3 }
  0x32   :  { %p2377_p8 = por %p2376_p7, %p2375_p6 }
  0x34   :  { %p2378_p9 = pnand %p2377_p8, %p2371_p5 }
  0x36   :  { %2381 = shalt.err (!%p2378_p9)
}
  0x37   :  { %91 = dma.hbm_to_vmem [thread:$0]  %s2758_s7, 16, %s89_s21, [#allocation12]  }
  0x38   :  { %s2382_s14 = scalar_lea.hbm %s2751_s0, 1024 }
  0x39   :  { %p2383_p10 = scmp.ne.s32.totalorder %s2751_s0, %s2382_s14  ;;  %p2386_p11 = scmp.lt.u32.totalorder %s2382_s14, %s2751_s0 }
  0x3b   :  { %p2388_p12 = pnand %p2386_p11, %p2383_p10 }
  0x3d   :  { %2391 = shalt.err (!%p2388_p12)
}
  0x3e   :  { %s2392_s26 = scalar_lea.vmem %s2601_s25, 1024  ;;  %p2397_p0 = scmp.lt.s32.totalorder %s2601_s25, %s2601_s25 }
  0x3f   :  { %p2393_p13 = scmp.ne.s32.totalorder %s2601_s25, %s2392_s26  ;;  %p2398_p1 = scmp.lt.s32.totalorder %s2392_s26, %s2392_s26 }
  0x41   :  { %p2399_p2 = por %p2398_p1, %p2397_p0 }
  0x43   :  { %p2400_p3 = pnand %p2399_p2, %p2393_p13 }
  0x45   :  { %2403 = shalt.err (!%p2400_p3)
}
  0x46   :  { %s2510_s7 = smov 512   ;;  %s2511_s21 = smov 32  }
  0x47   :  { %31 = dma.hbm_to_vmem [thread:$0]  %s2751_s0, 1024, %s2601_s25, [#allocation3], %s2510_s7, %s2510_s7, %s2511_s21  }
  0x48   :  { %s2512_s30 = smov [#allocation7]   ;;  %s2513_s12 = smov [#allocation10]  }
  0x49   :  { %s50_s11 = sshll.u32 %s2512_s30, 4  ;;  %s75_s13 = sshll.u32 %s2513_s12, 4  ;;  %s51_s11 = int_to_ptr.vmem [resolvable:$true] %s50_s11  ;;  %s2635_s13 = int_to_ptr.vmem [resolvable:$true] %s75_s13 }
  0x4a   :  { %s2404_s15 = scalar_lea.hbm %s2753_s2, 16 }
  0x4b   :  { %p2405_p4 = scmp.ne.s32.totalorder %s2753_s2, %s2404_s15  ;;  %p2408_p5 = scmp.lt.u32.totalorder %s2404_s15, %s2753_s2 }
  0x4d   :  { %p2410_p6 = pnand %p2408_p5, %p2405_p4 }
  0x4f   :  { %2413 = shalt.err (!%p2410_p6)
}
  0x50   :  { %s2414_s0 = scalar_lea.vmem %s51_s11, 16  ;;  %s2418_s25 = scalar_lea.vmem %s51_s11, 32 }
  0x51   :  { %p2415_p7 = scmp.ne.s32.totalorder %s51_s11, %s2414_s0  ;;  %p2419_p8 = scmp.lt.s32.totalorder %s51_s11, %s51_s11 }
  0x52   :  { %p2420_p9 = scmp.lt.s32.totalorder %s2418_s25, %s2414_s0 }
  0x54   :  { %p2421_p10 = por %p2420_p9, %p2419_p8 }
  0x56   :  { %p2422_p11 = pnand %p2421_p10, %p2415_p7 }
  0x58   :  { %2425 = shalt.err (!%p2422_p11)
}
  0x59   :  { %53 = dma.hbm_to_vmem [thread:$0]  %s2753_s2, 16, %s51_s11, [#allocation6]  }
  0x5a   :  { %s2426_s26 = scalar_lea.hbm %s2757_s6, 1024 }
  0x5b   :  { %p2427_p12 = scmp.ne.s32.totalorder %s2757_s6, %s2426_s26  ;;  %p2430_p13 = scmp.lt.u32.totalorder %s2426_s26, %s2757_s6 }
  0x5d   :  { %p2432_p0 = pnand %p2430_p13, %p2427_p12 }
  0x5f   :  { %2435 = shalt.err (!%p2432_p0)
}
  0x60   :  { %s2436_s3 = scalar_lea.vmem %s2635_s13, 1024  ;;  %p2441_p2 = scmp.lt.s32.totalorder %s2635_s13, %s2635_s13 }
  0x61   :  { %p2437_p1 = scmp.ne.s32.totalorder %s2635_s13, %s2436_s3  ;;  %p2442_p3 = scmp.lt.s32.totalorder %s2436_s3, %s2436_s3 }
  0x63   :  { %p2443_p4 = por %p2442_p3, %p2441_p2 }
  0x65   :  { %p2444_p5 = pnand %p2443_p4, %p2437_p1 }
  0x67   :  { %2447 = shalt.err (!%p2444_p5)
}
  0x68   :  { %81 = dma.hbm_to_vmem [thread:$0]  %s2757_s6, 1024, %s2635_s13, [#allocation9], %s2503_s23, %s2503_s23, %s2504_s24  }
  0x69   :  { %s2514_s28 = smov [#allocation13]   ;;  %s2448_s1 = scalar_lea.hbm %s2759_s8, 8192 }
  0x6a   :  { %s97_s15 = sshll.u32 %s2514_s28, 4  ;;  %p2449_p6 = scmp.ne.s32.totalorder %s2759_s8, %s2448_s1  ;;  %s98_s15 = int_to_ptr.vmem [resolvable:$true] %s97_s15 }
  0x6b   :  { %p2452_p7 = scmp.lt.u32.totalorder %s2448_s1, %s2759_s8 }
  0x6d   :  { %p2454_p8 = pnand %p2452_p7, %p2449_p6 }
  0x6f   :  { %2457 = shalt.err (!%p2454_p8)
}
  0x70   :  { %s2458_s19 = scalar_lea.vmem %s98_s15, 8192  ;;  %p2463_p10 = scmp.lt.s32.totalorder %s98_s15, %s98_s15 }
  0x71   :  { %p2459_p9 = scmp.ne.s32.totalorder %s98_s15, %s2458_s19  ;;  %p2464_p11 = scmp.lt.s32.totalorder %s2458_s19, %s2458_s19 }
  0x73   :  { %p2465_p12 = por %p2464_p11, %p2463_p10 }
  0x75   :  { %p2466_p13 = pnand %p2465_p12, %p2459_p9 }
  0x77   :  { %2469 = shalt.err (!%p2466_p13)
}
  0x78   :  { %103 = dma.hbm_to_vmem [thread:$0]  %s2759_s8, 8192, %s98_s15, [#allocation12], %s2510_s7, %s2510_s7, %s2511_s21  }
  0x79   :  { %2492 = dma.done.wait [#allocation3], 1024  }
  0x7a   :  { %2493 = vsyncadd [#allocation3], 4294966272 }
  0x7b   :  { %2494 = dma.done.wait [#allocation6], 8208  }
  0x7c   :  { %2495 = vsyncadd [#allocation6], 4294959088 }
  0x7d   :  { %2496 = dma.done.wait [#allocation9], 3072  }
  0x7e   :  { %2497 = vsyncadd [#allocation9], 4294964224 }
  0x7f   :  { %2498 = dma.done.wait [#allocation12], 8208  }
  0x80   :  { %2499 = vsyncadd [#allocation12], 4294959088  ;;  %v2184_v0 = vld [vmem:[#allocation5 + $0x40] sm:$0xff]   ;;  %v2188_v4 = vld [vmem:[#allocation5 + $0x48] sm:$0xff]   ;;  %vm2517_vm0 = vmmov 0  }
  0x81   :  { %v2185_v1 = vld [vmem:[#allocation5 + $0xc0] sm:$0xff]   ;;  %2050 = vmatprep.subr.bf16.mxu0 %v2184_v0  ;;  %v2189_v5 = vld [vmem:[#allocation5 + $0xc8] sm:$0xff]   ;;  %v2192_v8 = vld [vmem:[#allocation5 + $0x50] sm:$0xff]  }
  0x82   :  { %v2186_v2 = vld [vmem:[#allocation5] sm:$0xff]   ;;  %2072 = vmatprep.subr.bf16.mxu1 %v2185_v1  ;;  %v2190_v6 = vld [vmem:[#allocation5 + $0x8] sm:$0xff]   ;;  %v2193_v9 = vld [vmem:[#allocation5 + $0xd0] sm:$0xff]  }
  0x83   :  { %v2187_v3 = vld [vmem:[#allocation5 + $0x80] sm:$0xff]   ;;  %2051 = vmatpush3.bf16.msra.mxu0 %v2186_v2  ;;  %v2191_v7 = vld [vmem:[#allocation5 + $0x88] sm:$0xff]   ;;  %v2194_v10 = vld [vmem:[#allocation5 + $0x10] sm:$0xff]  }
  0x84   :  { %2073 = vmatpush3.bf16.msra.mxu1 %v2187_v3  ;;  %2052 = vmatprep.subr.bf16.mxu0 %v2188_v4  ;;  %v2195_v11 = vld [vmem:[#allocation5 + $0x90] sm:$0xff]   ;;  %v2196_v12 = vld [vmem:[#allocation5 + $0x58] sm:$0xff]   ;;  %v2200_v16 = vld [vmem:[#allocation5 + $0x60] sm:$0xff]  }
  0x85   :  { %2074 = vmatprep.subr.bf16.mxu1 %v2189_v5  ;;  %v2197_v13 = vld [vmem:[#allocation5 + $0xd8] sm:$0xff]   ;;  %v2201_v17 = vld [vmem:[#allocation5 + $0xe0] sm:$0xff]   ;;  %v2204_v20 = vld [vmem:[#allocation5 + $0x68] sm:$0xff]  }
  0x86   :  { %v2198_v14 = vld [vmem:[#allocation5 + $0x18] sm:$0xff]   ;;  %v2202_v18 = vld [vmem:[#allocation5 + $0x20] sm:$0xff]   ;;  %v2205_v21 = vld [vmem:[#allocation5 + $0xe8] sm:$0xff]  }
  0x87   :  { %2053 = vmatpush3.bf16.msra.mxu0 %v2190_v6  ;;  %v2199_v15 = vld [vmem:[#allocation5 + $0x98] sm:$0xff]   ;;  %v2203_v19 = vld [vmem:[#allocation5 + $0xa0] sm:$0xff]   ;;  %v2206_v22 = vld [vmem:[#allocation5 + $0x28] sm:$0xff]  }
  0x88   :  { %2075 = vmatpush3.bf16.msra.mxu1 %v2191_v7  ;;  %2054 = vmatprep.subr.bf16.mxu0 %v2192_v8  ;;  %v2207_v23 = vld [vmem:[#allocation5 + $0xa8] sm:$0xff]   ;;  %v2208_v24 = vld [vmem:[#allocation5 + $0x70] sm:$0xff]   ;;  %v2212_v28 = vld [vmem:[#allocation5 + $0x78] sm:$0xff]  }
  0x89   :  { %2076 = vmatprep.subr.bf16.mxu1 %v2193_v9  ;;  %v2209_v25 = vld [vmem:[#allocation5 + $0xf0] sm:$0xff]   ;;  %v2213_v29 = vld [vmem:[#allocation5 + $0xf8] sm:$0xff]   ;;  %v129_v32 = vld [vmem:[#allocation2] sm:$0xff] }
  0x8a   :  { %v2210_v26 = vld [vmem:[#allocation5 + $0x30] sm:$0xff]   ;;  %v2214_v30 = vld [vmem:[#allocation5 + $0x38] sm:$0xff]   ;;  %v133_v33 = vld [vmem:[#allocation2 + $0x20] sm:$0xff] }
  0x8b   :  { %2055 = vmatpush3.bf16.msra.mxu0 %v2194_v10  ;;  %v2211_v27 = vld [vmem:[#allocation5 + $0xb0] sm:$0xff]   ;;  %v2215_v31 = vld [vmem:[#allocation5 + $0xb8] sm:$0xff]   ;;  %v130_v34 = vld [vmem:[#allocation2 + $0x8] sm:$0xff]  ;;  %v1873_v35 = vcombine.low %v129_v32, %v133_v33  ;;  %v1874_v36 = vcombine.high %v129_v32, %v133_v33  ;;  %v2515_v32 = vmov 0  }
  0x8c   :  { %2077 = vmatpush3.bf16.msra.mxu1 %v2195_v11  ;;  %2056 = vmatprep.subr.bf16.mxu0 %v2196_v12  ;;  %v134_v37 = vld [vmem:[#allocation2 + $0x28] sm:$0xff]  ;;  %v2216_v40 = vld [vmem:[#allocation5 + $0x140] sm:$0xff]   ;;  %v2224_v48 = vld [vmem:[#allocation5 + $0x150] sm:$0xff]  }
  0x8d   :  { %2078 = vmatprep.subr.bf16.mxu1 %v2197_v13  ;;  %v1875_v38 = vcombine.low %v130_v34, %v134_v37  ;;  %v1876_v39 = vcombine.high %v130_v34, %v134_v37  ;;  %728 = vmatprep.mubr.bf16.mxu0 %v1874_v36  ;;  %v2217_v41 = vld [vmem:[#allocation5 + $0x1c0] sm:$0xff]   ;;  %v2220_v44 = vld [vmem:[#allocation5 + $0x148] sm:$0xff]   ;;  %v2225_v49 = vld [vmem:[#allocation5 + $0x1d0] sm:$0xff]   ;;  %v2516_v34 = vmov 0.0  }
  0x8e   :  { %v2218_v42 = vld [vmem:[#allocation5 + $0x100] sm:$0xff]   ;;  %v2221_v45 = vld [vmem:[#allocation5 + $0x1c8] sm:$0xff]   ;;  %v2226_v50 = vld [vmem:[#allocation5 + $0x110] sm:$0xff]  }
  0x8f   :  { %2057 = vmatpush3.bf16.msra.mxu0 %v2198_v14  ;;  %769 = vmatprep.mubr.bf16.mxu1 %v1876_v39  ;;  %v2219_v43 = vld [vmem:[#allocation5 + $0x180] sm:$0xff]   ;;  %v2222_v46 = vld [vmem:[#allocation5 + $0x108] sm:$0xff]   ;;  %v2227_v51 = vld [vmem:[#allocation5 + $0x190] sm:$0xff]  }
  0x90   :  { %2079 = vmatpush3.bf16.msra.mxu1 %v2199_v15  ;;  %2058 = vmatprep.subr.bf16.mxu0 %v2200_v16  ;;  %v2223_v47 = vld [vmem:[#allocation5 + $0x188] sm:$0xff]   ;;  %v2228_v52 = vld [vmem:[#allocation5 + $0x158] sm:$0xff]   ;;  %v2232_v56 = vld [vmem:[#allocation5 + $0x160] sm:$0xff]  }
  0x91   :  { %2080 = vmatprep.subr.bf16.mxu1 %v2201_v17  ;;  %v2229_v53 = vld [vmem:[#allocation5 + $0x1d8] sm:$0xff]   ;;  %v2233_v57 = vld [vmem:[#allocation5 + $0x1e0] sm:$0xff]   ;;  %v2236_v60 = vld [vmem:[#allocation5 + $0x168] sm:$0xff]  }
  0x92   :  { %v2230_v54 = vld [vmem:[#allocation5 + $0x118] sm:$0xff]   ;;  %v2234_v58 = vld [vmem:[#allocation5 + $0x120] sm:$0xff]   ;;  %v2237_v61 = vld [vmem:[#allocation5 + $0x1e8] sm:$0xff]  }
  0x93   :  { %2059 = vmatpush3.bf16.msra.mxu0 %v2202_v18  ;;  %v2231_v55 = vld [vmem:[#allocation5 + $0x198] sm:$0xff]   ;;  %v2235_v59 = vld [vmem:[#allocation5 + $0x1a0] sm:$0xff]   ;;  %v2238_v62 = vld [vmem:[#allocation5 + $0x128] sm:$0xff]  }
  0x94   :  { %2081 = vmatpush3.bf16.msra.mxu1 %v2203_v19  ;;  %2060 = vmatprep.subr.bf16.mxu0 %v2204_v20  ;;  %v2239_v63 = vld [vmem:[#allocation5 + $0x1a8] sm:$0xff]   ;;  %v2240_v0 = vld [vmem:[#allocation5 + $0x170] sm:$0xff]   ;;  %v2244_v4 = vld [vmem:[#allocation5 + $0x178] sm:$0xff]  }
  0x95   :  { %2082 = vmatprep.subr.bf16.mxu1 %v2205_v21  ;;  %v2241_v1 = vld [vmem:[#allocation5 + $0x1f0] sm:$0xff]   ;;  %v2245_v5 = vld [vmem:[#allocation5 + $0x1f8] sm:$0xff]   ;;  %v2248_v16 = vld [vmem:[#allocation8] ss:$8 sps:$4 sm:$0xff]  }
  0x96   :  { %v2242_v2 = vld [vmem:[#allocation5 + $0x130] sm:$0xff]   ;;  %v2246_v6 = vld [vmem:[#allocation5 + $0x138] sm:$0xff]   ;;  %v2254_v21 = vld [vmem:[#allocation8 + $0x20] ss:$8 sps:$4 sm:$0xff]  }
  0x97   :  { %2061 = vmatpush3.bf16.msra.mxu0 %v2206_v22  ;;  %v2243_v3 = vld [vmem:[#allocation5 + $0x1b0] sm:$0xff]   ;;  %v2247_v7 = vld [vmem:[#allocation5 + $0x1b8] sm:$0xff]   ;;  %v2272_v33 = vld [vmem:[#allocation10] sm:$0xff]  }
  0x98   :  { %2083 = vmatpush3.bf16.msra.mxu1 %v2207_v23  ;;  %2062 = vmatprep.subr.bf16.mxu0 %v2208_v24  ;;  %v131_v8 = vld [vmem:[#allocation2 + $0x10] sm:$0xff]  ;;  %v132_v12 = vld [vmem:[#allocation2 + $0x18] sm:$0xff]  ;;  %v1872_v37 = vld [vmem:[#allocation7] ss:$0 sm:$0xff] }
  0x99   :  { %2084 = vmatprep.subr.bf16.mxu1 %v2209_v25  ;;  %v135_v9 = vld [vmem:[#allocation2 + $0x30] sm:$0xff]  ;;  %v136_v13 = vld [vmem:[#allocation2 + $0x38] sm:$0xff]  ;;  %v2260_v25 = vld [vmem:[#allocation8 + $0x40] ss:$8 sps:$4 sm:$0xff]  }
  0x9a   :  { %v1877_v10 = vcombine.low %v131_v8, %v135_v9  ;;  %v1878_v11 = vcombine.high %v131_v8, %v135_v9  ;;  %v1879_v14 = vcombine.low %v132_v12, %v136_v13  ;;  %v1880_v15 = vcombine.high %v132_v12, %v136_v13  ;;  %v2250_v17 = vld [vmem:[#allocation8 + $0x4] ss:$8 sps:$4 sm:$0xff]   ;;  %v2253_v18 = vld [vmem:[#allocation8 + $0x14] ss:$8 sps:$4 sm:$0xff]   ;;  %v2251_v19 = vld [vmem:[#allocation8 + $0x10] ss:$8 sps:$4 sm:$0xff]  }
  0x9b   :  { %2063 = vmatpush3.bf16.msra.mxu0 %v2210_v26  ;;  %v2256_v20 = vld [vmem:[#allocation8 + $0x24] ss:$8 sps:$4 sm:$0xff]   ;;  %v2259_v22 = vld [vmem:[#allocation8 + $0x34] ss:$8 sps:$4 sm:$0xff]   ;;  %v2257_v23 = vld [vmem:[#allocation8 + $0x30] ss:$8 sps:$4 sm:$0xff]  }
  0x9c   :  { %2085 = vmatpush3.bf16.msra.mxu1 %v2211_v27  ;;  %2064 = vmatprep.subr.bf16.mxu0 %v2212_v28  ;;  %v2262_v24 = vld [vmem:[#allocation8 + $0x44] ss:$8 sps:$4 sm:$0xff]   ;;  %v2265_v26 = vld [vmem:[#allocation8 + $0x54] ss:$8 sps:$4 sm:$0xff]   ;;  %v2263_v27 = vld [vmem:[#allocation8 + $0x50] ss:$8 sps:$4 sm:$0xff]  }
  0x9d   :  { %2086 = vmatprep.subr.bf16.mxu1 %v2213_v29  ;;  %v2268_v28 = vld [vmem:[#allocation8 + $0x64] ss:$8 sps:$4 sm:$0xff]   ;;  %v2266_v29 = vld [vmem:[#allocation8 + $0x60] ss:$8 sps:$4 sm:$0xff]   ;;  %v2274_v8 = vld [vmem:[#allocation10 + $0x10] sm:$0xff]  }
  0x9e   :  { %v2275_v9 = vld [vmem:[#allocation10 + $0x18] sm:$0xff]   ;;  %v2278_v12 = vld [vmem:[#allocation10 + $0x30] sm:$0xff]  }
  0x9f   :  { %2065 = vmatpush3.bf16.msra.mxu0 %v2214_v30  ;;  %v2271_v30 = vld [vmem:[#allocation8 + $0x74] ss:$8 sps:$4 sm:$0xff]  }
  0xa0   :  { %2087 = vmatpush3.bf16.msra.mxu1 %v2215_v31  ;;  %2094 = vmatprep.subr.bf16.mxu0 %v2216_v40  ;;  %v2269_v31 = vld [vmem:[#allocation8 + $0x70] ss:$8 sps:$4 sm:$0xff]  }
  0xa1   :  { %2116 = vmatprep.subr.bf16.mxu1 %v2217_v41  ;;  %v2279_v13 = vld [vmem:[#allocation10 + $0x38] sm:$0xff]  }
  0xa2   :  { %729 = vmatmul.mubr.bf16.vlgmr.msra.gmra.mrb[0].mxu0 %v1873_v35 }
  0xa3   :  { %770 = vmatmul.mubr.bf16.vlgmr.msra.gmra.mrb[0].mxu1 %v1875_v38  ;;  %2095 = vmatpush3.bf16.msra.mxu0 %v2218_v42 }
  0xa4   :  { %2117 = vmatpush3.bf16.msra.mxu1 %v2219_v43  ;;  %2096 = vmatprep.subr.bf16.mxu0 %v2220_v44 }
  0xa5   :  { %2118 = vmatprep.subr.bf16.mxu1 %v2221_v45  ;;  %810 = vmatprep.mubr.bf16.mxu0 %v1878_v11  ;;  %v2277_v11 = vld [vmem:[#allocation10 + $0x28] sm:$0xff]  }
  0xa6   :  { %851 = vmatprep.mubr.bf16.mxu1 %v1880_v15  ;;  %v1146_v15 = vld [vmem:[#allocation13 + $0x20] sm:$0xff] }
  0xa7   :  { %2097 = vmatpush3.bf16.msra.mxu0 %v2222_v46 }
  0xa8   :  { %2119 = vmatpush3.bf16.msra.mxu1 %v2223_v47  ;;  %2098 = vmatprep.subr.bf16.mxu0 %v2224_v48 }
  0xa9   :  { %2120 = vmatprep.subr.bf16.mxu1 %v2225_v49 }
  0xab   :  { %2099 = vmatpush3.bf16.msra.mxu0 %v2226_v50 }
  0xac   :  { %2121 = vmatpush3.bf16.msra.mxu1 %v2227_v51  ;;  %2100 = vmatprep.subr.bf16.mxu0 %v2228_v52 }
  0xad   :  { %2122 = vmatprep.subr.bf16.mxu1 %v2229_v53 }
  0xaf   :  { %2101 = vmatpush3.bf16.msra.mxu0 %v2230_v54 }
  0xb0   :  { %2123 = vmatpush3.bf16.msra.mxu1 %v2231_v55  ;;  %2102 = vmatprep.subr.bf16.mxu0 %v2232_v56 }
  0xb1   :  { %2124 = vmatprep.subr.bf16.mxu1 %v2233_v57 }
  0xb3   :  { %2103 = vmatpush3.bf16.msra.mxu0 %v2234_v58 }
  0xb4   :  { %2125 = vmatpush3.bf16.msra.mxu1 %v2235_v59  ;;  %2104 = vmatprep.subr.bf16.mxu0 %v2236_v60 }
  0xb5   :  { %2126 = vmatprep.subr.bf16.mxu1 %v2237_v61 }
  0xb7   :  { %2105 = vmatpush3.bf16.msra.mxu0 %v2238_v62 }
  0xb8   :  { %2127 = vmatpush3.bf16.msra.mxu1 %v2239_v63  ;;  %2106 = vmatprep.subr.bf16.mxu0 %v2240_v0 }
  0xb9   :  { %2128 = vmatprep.subr.bf16.mxu1 %v2241_v1 }
  0xbb   :  { %2107 = vmatpush3.bf16.msra.mxu0 %v2242_v2 }
  0xbc   :  { %2129 = vmatpush3.bf16.msra.mxu1 %v2243_v3  ;;  %2108 = vmatprep.subr.bf16.mxu0 %v2244_v4 }
  0xbd   :  { %2130 = vmatprep.subr.bf16.mxu1 %v2245_v5 }
  0xbf   :  { %2109 = vmatpush3.bf16.msra.mxu0 %v2246_v6 }
  0xc0   :  { %2131 = vmatpush3.bf16.msra.mxu1 %v2247_v7  ;;  %971 = vmatprep.subr.bf16.mxu0 %v2250_v17  ;;  %v2273_v7 = vld [vmem:[#allocation10 + $0x8] sm:$0xff]  }
  0xc1   :  { %2147 = vmatprep.subr.bf16.mxu1 %v2516_v34 }
  0xc2   :  { %811 = vmatmul.mubr.bf16.vlgmr.msra.gmra.mrb[4].mxu0 %v1877_v10  ;;  %v2276_v10 = vld [vmem:[#allocation10 + $0x20] sm:$0xff]  }
  0xc3   :  { %852 = vmatmul.mubr.bf16.vlgmr.msra.gmra.mrb[4].mxu1 %v1879_v14  ;;  %972 = vmatpush1.bf16.msra.mxu0 %v2248_v16  ;;  %v1142_v14 = vld [vmem:[#allocation13] sm:$0xff]  ;;  %v2686_v16 = vld [vmem:[#allocation13 + $0x8] sm:$0xff] }
  0xc4   :  { %973 = vmatprep.subr.bf16.mxu0 %v2253_v18  ;;  %1003 = vmatprep.mubr.bf16.mxu0 %v2515_v32  ;;  %v1970_v17 = vcombine.low %v1142_v14, %v1146_v15  ;;  %v1971_v18 = vcombine.high %v1142_v14, %v1146_v15  ;;  %v1167_v14 = vld [vmem:[#allocation13 + $0xc8] sm:$0xff] }
  0xc5   :  { %2148 = vmatpush3.bf16.msra.mxu1 %v2272_v33  ;;  %2163 = vmatprep.mubr.msk.bf16.mxu1 %vm2517_vm0, %v2516_v34  ;;  %v1171_v15 = vld [vmem:[#allocation13 + $0xe8] sm:$0xff] }
  0xc6   :  { %2149 = vmatprep.subr.bf16.mxu1 %v2516_v34 }
  0xc7   :  { %974 = vmatpush1.bf16.msra.mxu0 %v2251_v19  ;;  %v2688_v19 = vld [vmem:[#allocation13 + $0x28] sm:$0xff] }
  0xc8   :  { %975 = vmatprep.subr.bf16.mxu0 %v2256_v20  ;;  %v1150_v20 = vld [vmem:[#allocation13 + $0x40] sm:$0xff] }
  0xc9   :  { %2150 = vmatpush3.bf16.msra.mxu1 %v2273_v7 }
  0xca   :  { %2151 = vmatprep.subr.bf16.mxu1 %v2516_v34 }
  0xcb   :  { %976 = vmatpush1.bf16.msra.mxu0 %v2254_v21  ;;  %v1154_v21 = vld [vmem:[#allocation13 + $0x60] sm:$0xff] }
  0xcc   :  { %977 = vmatprep.subr.bf16.mxu0 %v2259_v22  ;;  %v1972_v22 = vcombine.low %v2686_v16, %v2688_v19 }
  0xcd   :  { %2152 = vmatpush3.bf16.msra.mxu1 %v2274_v8 }
  0xce   :  { %2153 = vmatprep.subr.bf16.mxu1 %v2516_v34 }
  0xcf   :  { %978 = vmatpush1.bf16.msra.mxu0 %v2257_v23  ;;  %v1973_v23 = vcombine.high %v2686_v16, %v2688_v19  ;;  %v1187_v16 = vld [vmem:[#allocation13 + $0x168] sm:$0xff] }
  0xd0   :  { %979 = vmatprep.subr.bf16.mxu0 %v2262_v24  ;;  %v1979_v24 = vcombine.high %v1150_v20, %v1154_v21 }
  0xd1   :  { %2154 = vmatpush3.bf16.msra.mxu1 %v2275_v9 }
  0xd2   :  { %2155 = vmatprep.subr.bf16.mxu1 %v2516_v34 }
  0xd3   :  { %980 = vmatpush1.bf16.msra.mxu0 %v2260_v25  ;;  %v1978_v25 = vcombine.low %v1150_v20, %v1154_v21  ;;  %v1175_v20 = vld [vmem:[#allocation13 + $0x108] sm:$0xff] }
  0xd4   :  { %981 = vmatprep.subr.bf16.mxu0 %v2265_v26  ;;  %v1158_v26 = vld [vmem:[#allocation13 + $0x80] sm:$0xff]  ;;  %v1179_v21 = vld [vmem:[#allocation13 + $0x128] sm:$0xff] }
  0xd5   :  { %2156 = vmatpush3.bf16.msra.mxu1 %v2276_v10  ;;  %v1159_v10 = vld [vmem:[#allocation13 + $0x88] sm:$0xff]  ;;  %v2004_v19 = vcombine.low %v1175_v20, %v1179_v21 }
  0xd6   :  { %2157 = vmatprep.subr.bf16.mxu1 %v2516_v34 }
  0xd7   :  { %982 = vmatpush1.bf16.msra.mxu0 %v2263_v27  ;;  %v1162_v27 = vld [vmem:[#allocation13 + $0xa0] sm:$0xff] }
  0xd8   :  { %983 = vmatprep.subr.bf16.mxu0 %v2268_v28  ;;  %v1987_v28 = vcombine.high %v1158_v26, %v1162_v27 }
  0xd9   :  { %2158 = vmatpush3.bf16.msra.mxu1 %v2277_v11  ;;  %v1163_v11 = vld [vmem:[#allocation13 + $0xa8] sm:$0xff] }
  0xda   :  { %2159 = vmatprep.subr.bf16.mxu1 %v2516_v34 }
  0xdb   :  { %984 = vmatpush1.bf16.msra.mxu0 %v2266_v29  ;;  %v1986_v29 = vcombine.low %v1158_v26, %v1162_v27  ;;  %v1190_v27 = vld [vmem:[#allocation13 + $0x180] sm:$0xff] }
  0xdc   :  { %985 = vmatprep.subr.bf16.mxu0 %v2271_v30  ;;  %v1166_v30 = vld [vmem:[#allocation13 + $0xc0] sm:$0xff] }
  0xdd   :  { %2160 = vmatpush3.bf16.msra.mxu1 %v2278_v12 }
  0xde   :  { %2161 = vmatprep.subr.bf16.mxu1 %v2516_v34 }
  0xdf   :  { %986 = vmatpush1.bf16.msra.mxu0 %v2269_v31  ;;  %v1170_v31 = vld [vmem:[#allocation13 + $0xe0] sm:$0xff] }
  0xe0   :  { %1568 = vmatprep.subr.bf16.mxu0 %v1971_v18  ;;  %v1995_v33 = vcombine.high %v1166_v30, %v1170_v31  ;;  %v1994_v34 = vcombine.low %v1166_v30, %v1170_v31  ;;  %v1997_v18 = vcombine.high %v1167_v14, %v1171_v15  ;;  %v1195_v31 = vld [vmem:[#allocation13 + $0x1a8] sm:$0xff] }
  0xe1   :  { %2162 = vmatpush3.bf16.msra.mxu1 %v2279_v13  ;;  %v1989_v13 = vcombine.high %v1159_v10, %v1163_v11 }
  0xe2   :  { %1611 = vmatprep.subr.bf16.mxu1 %v1973_v23  ;;  %v1996_v23 = vcombine.low %v1167_v14, %v1171_v15  ;;  %v1168_v15 = vld [vmem:[#allocation13 + $0xd0] sm:$0xff] }
 0x175   :  { %v2066_v35 = vpop.f32.mrb[0].mxu0 }
 0x176   :  { %v2088_v36 = vpop.f32.mrb[0].mxu1  ;;  %v2067_v38 = vpop.f32.mrb[1].mxu0 }
 0x177   :  { %v2068_v39 = vadd.f32 %v2067_v38, %v2066_v35  ;;  %v2089_v40 = vpop.f32.mrb[1].mxu1  ;;  %v2069_v41 = vpop.f32.mrb[2].mxu0  ;;  %v1174_v35 = vld [vmem:[#allocation13 + $0x100] sm:$0xff] }
 0x178   :  { %v2090_v42 = vadd.f32 %v2089_v40, %v2088_v36  ;;  %v2091_v43 = vpop.f32.mrb[2].mxu1  ;;  %v2070_v44 = vpop.f32.mrb[3].mxu0  ;;  %v1178_v36 = vld [vmem:[#allocation13 + $0x120] sm:$0xff] }
 0x179   :  { %v731_v45 = vadd.f32 %v2068_v39, %v1872_v37  ;;  %v2071_v46 = vadd.f32 %v2070_v44, %v2069_v41  ;;  %v2092_v47 = vpop.f32.mrb[3].mxu1  ;;  %v2002_v38 = vcombine.low %v1174_v35, %v1178_v36  ;;  %v1182_v39 = vld [vmem:[#allocation13 + $0x140] sm:$0xff] }
 0x17a   :  { %v2093_v48 = vadd.f32 %v2092_v47, %v2091_v43  ;;  %v1186_v40 = vld [vmem:[#allocation13 + $0x160] sm:$0xff]  ;;  %v881_v43 = vlaneseq }
 0x17b   :  { %v772_v49 = vadd.f32 %v2090_v42, %v731_v45  ;;  %v734_v50 = vadd.f32 %v2071_v46, %v1872_v37  ;;  %v2003_v37 = vcombine.high %v1174_v35, %v1178_v36  ;;  %v2011_v41 = vcombine.high %v1182_v39, %v1186_v40  ;;  %v879_v46 = vld [vmem:[%s2755_s4] sm:$0x3]  ;;  %v1198_v36 = vld [vmem:[#allocation13 + $0x1c0] sm:$0xff] }
 0x17c   :  { %v2010_v42 = vcombine.low %v1182_v39, %v1186_v40  ;;  %v2694_v44 = vshrl.u32 %v881_v43, 7  ;;  %v1203_v40 = vld [vmem:[#allocation13 + $0x1e8] sm:$0xff] }
 0x17d   :  { %v775_v51 = vadd.f32 %v2093_v48, %v734_v50 }
 0x17e   :  { %v887_v45 = vsub.s32 1, %v2694_v44 }
 0x180   :  { %v888_v47 = vrot.slane %v879_v46, %v887_v45 }
 0x195   :  { %v2110_v52 = vpop.f32.mrb[4].mxu0 }
 0x196   :  { %v2132_v53 = vpop.f32.mrb[4].mxu1  ;;  %v2111_v54 = vpop.f32.mrb[5].mxu0 }
 0x197   :  { %v2112_v55 = vadd.f32 %v2111_v54, %v2110_v52  ;;  %v2133_v56 = vpop.f32.mrb[5].mxu1  ;;  %v2113_v57 = vpop.f32.mrb[6].mxu0 }
 0x198   :  { %v2134_v58 = vadd.f32 %v2133_v56, %v2132_v53  ;;  %v2135_v59 = vpop.f32.mrb[6].mxu1  ;;  %v2114_v60 = vpop.f32.mrb[7].mxu0 }
 0x199   :  { %v813_v61 = vadd.f32 %v2112_v55, %v772_v49  ;;  %v2115_v62 = vadd.f32 %v2114_v60, %v2113_v57  ;;  %v2136_v63 = vpop.f32.mrb[7].mxu1  ;;  %v1020_v60 = vld [vmem:[%s2756_s5] sm:$0xff] }
 0x19a   :  { %v2137_v0 = vadd.f32 %v2136_v63, %v2135_v59 }
 0x19b   :  { %v854_v1 = vadd.f32 %v2134_v58, %v813_v61  ;;  %v816_v2 = vadd.f32 %v2115_v62, %v775_v51  ;;  %v883_v58 = vsub.s32 0, %v2694_v44  ;;  %v1021_v62 = vld [vmem:[%s2756_s5 + $0x8] sm:$0xff] }
 0x19d   :  { %v857_v3 = vadd.f32 %v2137_v0, %v816_v2  ;;  %v860_v4 = vmax.f32 %v854_v1, 0.0  ;;  %v884_v59 = vrot.slane %v879_v46, %v883_v58  ;;  %v1144_v46 = vld [vmem:[#allocation13 + $0x10] sm:$0xff] }
 0x19f   :  { %v861_v5 = vmax.f32 %v857_v3, 0.0 }
 0x1a1   :  { %v862_v6 = vpack.c.bf16 %v861_v5, %v860_v4  ;;  %v1151_v5 = vld [vmem:[#allocation13 + $0x48] sm:$0xff] }
 0x1a3   :  { %1004 = vmatmul.mubr.bf16.vlgmr.msra.gmra.mrb[8].mxu0 %v862_v6  ;;  %v1155_v6 = vld [vmem:[#allocation13 + $0x68] sm:$0xff] }
 0x1a4   :  { %1600 = vmatprep.mubr.bf16.mxu0 %v2515_v32  ;;  %1569 = vmatpush1.bf16.msra.mxu0 %v1970_v17  ;;  %v1981_v9 = vcombine.high %v1151_v5, %v1155_v6  ;;  %v1980_v12 = vcombine.low %v1151_v5, %v1155_v6  ;;  %v1988_v17 = vcombine.low %v1159_v10, %v1163_v11  ;;  %v1165_v10 = vld [vmem:[#allocation13 + $0xb8] sm:$0xff] }
 0x1a5   :  { %1570 = vmatprep.subr.bf16.mxu0 %v1979_v24  ;;  %v2005_v24 = vcombine.high %v1175_v20, %v1179_v21  ;;  %v1173_v20 = vld [vmem:[#allocation13 + $0xf8] sm:$0xff] }
 0x1a8   :  { %1571 = vmatpush1.bf16.msra.mxu0 %v1978_v25  ;;  %v1183_v25 = vld [vmem:[#allocation13 + $0x148] sm:$0xff] }
 0x1a9   :  { %1572 = vmatprep.subr.bf16.mxu0 %v1987_v28  ;;  %v2012_v26 = vcombine.low %v1183_v25, %v1187_v16  ;;  %v1194_v28 = vld [vmem:[#allocation13 + $0x1a0] sm:$0xff] }
 0x1aa   :  { %v2019_v30 = vcombine.high %v1190_v27, %v1194_v28 }
 0x1ac   :  { %1573 = vmatpush1.bf16.msra.mxu0 %v1986_v29  ;;  %v1191_v29 = vld [vmem:[#allocation13 + $0x188] sm:$0xff] }
 0x1ad   :  { %1574 = vmatprep.subr.bf16.mxu0 %v1995_v33  ;;  %v2018_v33 = vcombine.low %v1190_v27, %v1194_v28  ;;  %v2021_v35 = vcombine.high %v1191_v29, %v1195_v31 }
 0x1b0   :  { %1575 = vmatpush1.bf16.msra.mxu0 %v1994_v34  ;;  %v2020_v34 = vcombine.low %v1191_v29, %v1195_v31  ;;  %v1188_v31 = vld [vmem:[#allocation13 + $0x170] sm:$0xff] }
 0x1b1   :  { %1576 = vmatprep.subr.bf16.mxu0 %v2003_v37  ;;  %v1202_v37 = vld [vmem:[#allocation13 + $0x1e0] sm:$0xff] }
 0x1b2   :  { %v2027_v39 = vcombine.high %v1198_v36, %v1202_v37 }
 0x1b4   :  { %1577 = vmatpush1.bf16.msra.mxu0 %v2002_v38  ;;  %v1199_v38 = vld [vmem:[#allocation13 + $0x1c8] sm:$0xff] }
 0x1b5   :  { %1578 = vmatprep.subr.bf16.mxu0 %v2011_v41  ;;  %v2026_v41 = vcombine.low %v1198_v36, %v1202_v37  ;;  %v2029_v43 = vcombine.high %v1199_v38, %v1203_v40 }
 0x1b8   :  { %1579 = vmatpush1.bf16.msra.mxu0 %v2010_v42  ;;  %v2028_v42 = vcombine.low %v1199_v38, %v1203_v40  ;;  %v1196_v40 = vld [vmem:[#allocation13 + $0x1b0] sm:$0xff] }
 0x1b9   :  { %1580 = vmatprep.subr.bf16.mxu0 %v2019_v30  ;;  %v1184_v30 = vld [vmem:[#allocation13 + $0x150] sm:$0xff] }
 0x1ba   :  { %v2015_v37 = vcombine.high %v1184_v30, %v1188_v31 }
 0x1bc   :  { %1581 = vmatpush1.bf16.msra.mxu0 %v2018_v33  ;;  %v1185_v33 = vld [vmem:[#allocation13 + $0x158] sm:$0xff] }
 0x1bd   :  { %1582 = vmatprep.subr.bf16.mxu0 %v2027_v39  ;;  %v1192_v39 = vld [vmem:[#allocation13 + $0x190] sm:$0xff] }
 0x1c0   :  { %1583 = vmatpush1.bf16.msra.mxu0 %v2026_v41  ;;  %v1193_v41 = vld [vmem:[#allocation13 + $0x198] sm:$0xff] }
 0x276   :  { %v1005_v48 = vpop.f32.mrb[8].mxu0 }
 0x277   :  { %v1007_v49 = vpop.f32.mrb[9].mxu0  ;;  %v1006_v63 = vadd.f32 %v1005_v48, %v884_v59  ;;  %v1145_v48 = vld [vmem:[#allocation13 + $0x18] sm:$0xff] }
 0x278   :  { %v1008_v50 = vadd.f32 %v1007_v49, %v888_v47  ;;  %v1009_v51 = vpop.f32.mrb[10].mxu0 }
 0x279   :  { %v1011_v52 = vpop.f32.mrb[11].mxu0  ;;  %v1010_v2 = vadd.f32 %v1009_v51, %v884_v59  ;;  %v1149_v51 = vld [vmem:[#allocation13 + $0x38] sm:$0xff] }
 0x27a   :  { %v1014_v53 = vmul.f32 0.5, %v1008_v50  ;;  %v1012_v54 = vadd.f32 %v1011_v52, %v888_v47  ;;  %v1148_v47 = vld [vmem:[#allocation13 + $0x30] sm:$0xff]  ;;  %v1976_v52 = vcombine.low %v1145_v48, %v1149_v51 }
 0x27b   :  { %v1974_v49 = vcombine.low %v1144_v46, %v1148_v47  ;;  %v1975_v50 = vcombine.high %v1144_v46, %v1148_v47  ;;  %v2023_v47 = vcombine.high %v1192_v39, %v1196_v40 }
 0x27c   :  { %v1016_v55 = vmul.f32 1.442695, %v1014_v53  ;;  %v1015_v56 = vmul.f32 0.5, %v1012_v54  ;;  %v1977_v53 = vcombine.high %v1145_v48, %v1149_v51  ;;  %v1961_v54 = vld [vmem:[#allocation11] ss:$0 sm:$0xff] }
 0x27d   :  { %1654 = vmatprep.subr.bf16.mxu0 %v1975_v50  ;;  %v1204_v50 = vld [vmem:[#allocation13 + $0x1f0] sm:$0xff]  ;;  %v1201_v51 = vld [vmem:[#allocation13 + $0x1d8] sm:$0xff] }
 0x27e   :  { %2280 = vpow2.f32 %v1016_v55  ;;  %v1018_v57 = vmul.f32 1.442695, %v1015_v56 }
 0x280   :  { %2282 = vpow2.f32 %v1018_v57 }
 0x288   :  { %v2281_v61 = vpop.eup %2280 }
 0x289   :  { %v1022_v0 = vmul.f32 %v2281_v61, %v1020_v60 }
 0x28a   :  { %v2283_v1 = vpop.eup %2282 }
 0x28b   :  { %v1023_v3 = vmul.f32 %v2283_v1, %v1021_v62  ;;  %v1024_v4 = vadd.f32 %v1022_v0, %v1006_v63  ;;  %v1152_v62 = vld [vmem:[#allocation13 + $0x50] sm:$0xff]  ;;  %v1153_v0 = vld [vmem:[#allocation13 + $0x58] sm:$0xff] }
 0x28c   :  { %v1156_v63 = vld [vmem:[#allocation13 + $0x70] sm:$0xff]  ;;  %v1157_v1 = vld [vmem:[#allocation13 + $0x78] sm:$0xff] }
 0x28d   :  { %v1025_v7 = vadd.f32 %v1023_v3, %v1010_v2  ;;  %v1983_v5 = vcombine.high %v1152_v62, %v1156_v63  ;;  %v1985_v6 = vcombine.high %v1153_v0, %v1157_v1  ;;  %v1982_v11 = vcombine.low %v1152_v62, %v1156_v63 }
 0x28e   :  { %v1222_v62 = vsub.s32 3, %v2694_v44 }
 0x28f   :  { %v1026_v8 = vpack.c.bf16 %v1025_v7, %v1024_v4  ;;  %v1160_v7 = vld [vmem:[#allocation13 + $0x90] sm:$0xff] }
 0x291   :  { %2164 = vmatmul.mubr.bf16.vlgmr.msra.gmra.mrb[8].mxu1 %v1026_v8  ;;  %v1164_v8 = vld [vmem:[#allocation13 + $0xb0] sm:$0xff] }
 0x292   :  { %1612 = vmatpush1.bf16.msra.mxu1 %v1972_v22  ;;  %1643 = vmatprep.mubr.bf16.mxu1 %v2515_v32  ;;  %v2013_v22 = vcombine.high %v1183_v25, %v1187_v16  ;;  %v1990_v21 = vcombine.low %v1160_v7, %v1164_v8  ;;  %v1176_v16 = vld [vmem:[#allocation13 + $0x110] sm:$0xff] }
 0x293   :  { %1613 = vmatprep.subr.bf16.mxu1 %v1981_v9  ;;  %v1161_v9 = vld [vmem:[#allocation13 + $0x98] sm:$0xff] }
 0x294   :  { %v1993_v14 = vcombine.high %v1161_v9, %v1165_v10 }
 0x296   :  { %1614 = vmatpush1.bf16.msra.mxu1 %v1980_v12  ;;  %v1984_v12 = vcombine.low %v1153_v0, %v1157_v1 }
 0x297   :  { %1615 = vmatprep.subr.bf16.mxu1 %v1989_v13  ;;  %v1991_v13 = vcombine.high %v1160_v7, %v1164_v8 }
 0x29a   :  { %1616 = vmatpush1.bf16.msra.mxu1 %v1988_v17  ;;  %v1172_v17 = vld [vmem:[#allocation13 + $0xf0] sm:$0xff] }
 0x29b   :  { %1617 = vmatprep.subr.bf16.mxu1 %v1997_v18  ;;  %v1169_v18 = vld [vmem:[#allocation13 + $0xd8] sm:$0xff]  ;;  %v1998_v27 = vcombine.low %v1168_v15, %v1172_v17 }
 0x29c   :  { %v2001_v25 = vcombine.high %v1169_v18, %v1173_v20  ;;  %v2000_v28 = vcombine.low %v1169_v18, %v1173_v20 }
 0x29e   :  { %1618 = vmatpush1.bf16.msra.mxu1 %v1996_v23  ;;  %v1992_v23 = vcombine.low %v1161_v9, %v1165_v10 }
 0x29f   :  { %1619 = vmatprep.subr.bf16.mxu1 %v2005_v24  ;;  %v1999_v24 = vcombine.high %v1168_v15, %v1172_v17 }
 0x2a2   :  { %1620 = vmatpush1.bf16.msra.mxu1 %v2004_v19  ;;  %v1180_v19 = vld [vmem:[#allocation13 + $0x130] sm:$0xff] }
 0x2a3   :  { %1621 = vmatprep.subr.bf16.mxu1 %v2013_v22  ;;  %v1177_v22 = vld [vmem:[#allocation13 + $0x118] sm:$0xff]  ;;  %v2007_v29 = vcombine.high %v1176_v16, %v1180_v19 }
 0x2a6   :  { %1622 = vmatpush1.bf16.msra.mxu1 %v2012_v26  ;;  %v1181_v26 = vld [vmem:[#allocation13 + $0x138] sm:$0xff] }
 0x2a7   :  { %1623 = vmatprep.subr.bf16.mxu1 %v2021_v35  ;;  %v2006_v35 = vcombine.low %v1176_v16, %v1180_v19  ;;  %v2008_v36 = vcombine.low %v1177_v22, %v1181_v26 }
 0x2aa   :  { %1624 = vmatpush1.bf16.msra.mxu1 %v2020_v34  ;;  %v1189_v34 = vld [vmem:[#allocation13 + $0x178] sm:$0xff] }
 0x2ab   :  { %1625 = vmatprep.subr.bf16.mxu1 %v2029_v43  ;;  %v2017_v38 = vcombine.high %v1185_v33, %v1189_v34  ;;  %v2014_v43 = vcombine.low %v1184_v30, %v1188_v31  ;;  %v2016_v46 = vcombine.low %v1185_v33, %v1189_v34  ;;  %v1226_v33 = vsub.s32 4, %v2694_v44 }
 0x2ac   :  { %v1234_v34 = vsub.s32 6, %v2694_v44 }
 0x2ae   :  { %1626 = vmatpush1.bf16.msra.mxu1 %v2028_v42  ;;  %v1197_v42 = vld [vmem:[#allocation13 + $0x1b8] sm:$0xff] }
 0x2af   :  { %1697 = vmatprep.subr.bf16.mxu1 %v1977_v53  ;;  %v2025_v48 = vcombine.high %v1193_v41, %v1197_v42  ;;  %v2022_v53 = vcombine.low %v1192_v39, %v1196_v40 }
 0x364   :  { %v1132_v55 = vpop.f32.mrb[8].mxu1 }
 0x365   :  { %v1133_v56 = vadd.f32 %v1961_v54, %v1132_v55  ;;  %v2165_v57 = vpop.f32.mrb[9].mxu1 }
 0x366   :  { %v1135_v59 = vpop.f32.mrb[10].mxu1 }
 0x367   :  { %v1136_v60 = vadd.f32 %v1961_v54, %v1135_v59  ;;  %v2166_v61 = vpop.f32.mrb[11].mxu1  ;;  %v1139_v2 = vmax.f32 %v1133_v56, 0.0  ;;  %v2024_v54 = vcombine.low %v1193_v41, %v1197_v42 }
 0x368   :  { %v1206_v61 = vld [vmem:[%s2760_s9] sm:$0xff]  ;;  %s2518_s9 = smov [#allocation14]  }
 0x369   :  { %v1140_v3 = vmax.f32 %v1136_v60, 0.0  ;;  %v1218_v60 = vsub.s32 2, %v2694_v44  ;;  %v1211_v63 = vrot.slane %v1206_v61, %v883_v58  ;;  %s1857_s27 = sshll.u32 %s2518_s9, 4  ;;  %s1858_s27 = int_to_ptr.vmem [resolvable:$true] %s1857_s27 }
 0x36a   :  { %s2470_s29 = scalar_lea.vmem %s1858_s27, 1024  ;;  %p2475_p1 = scmp.lt.s32.totalorder %s1858_s27, %s1858_s27 }
 0x36b   :  { %v2715_v4 = vpack.c.bf16 %v1140_v3, %v1139_v2  ;;  %v1219_v0 = vrot.slane %v1206_v61, %v1218_v60  ;;  %v1215_v3 = vrot.slane %v1206_v61, %v887_v45  ;;  %p2471_p0 = scmp.ne.s32.totalorder %s1858_s27, %s2470_s29  ;;  %p2476_p2 = scmp.lt.s32.totalorder %s2470_s29, %s2470_s29 }
 0x36d   :  { %1601 = vmatmul.mubr.bf16.vlgmr.msra.gmra.mrb[12].mxu0 %v2715_v4  ;;  %1644 = vmatmul.mubr.bf16.vlgmr.msra.gmra.mrb[12].mxu1 %v2715_v4  ;;  %p2477_p3 = por %p2476_p2, %p2475_p1 }
 0x36e   :  { %1655 = vmatpush1.bf16.msra.mxu0 %v1974_v49  ;;  %1698 = vmatpush1.bf16.msra.mxu1 %v1976_v52  ;;  %v1200_v49 = vld [vmem:[#allocation13 + $0x1d0] sm:$0xff]  ;;  %v1205_v52 = vld [vmem:[#allocation13 + $0x1f8] sm:$0xff] }
 0x36f   :  { %1656 = vmatprep.subr.bf16.mxu0 %v1983_v5  ;;  %1699 = vmatprep.subr.bf16.mxu1 %v1985_v6  ;;  %v2031_v55 = vcombine.high %v1200_v49, %v1204_v50  ;;  %v2033_v56 = vcombine.high %v1201_v51, %v1205_v52  ;;  %v2030_v57 = vcombine.low %v1200_v49, %v1204_v50  ;;  %p2478_p4 = pnand %p2477_p3, %p2471_p0 }
 0x370   :  { %1686 = vmatprep.mubr.bf16.mxu0 %v2515_v32  ;;  %1729 = vmatprep.mubr.bf16.mxu1 %v2515_v32  ;;  %v2009_v32 = vcombine.high %v1177_v22, %v1181_v26  ;;  %v2032_v59 = vcombine.low %v1201_v51, %v1205_v52  ;;  %v1223_v5 = vrot.slane %v1206_v61, %v1222_v62 }
 0x372   :  { %1657 = vmatpush1.bf16.msra.mxu0 %v1982_v11  ;;  %1700 = vmatpush1.bf16.msra.mxu1 %v1984_v12 }
 0x373   :  { %1658 = vmatprep.subr.bf16.mxu0 %v1991_v13  ;;  %1701 = vmatprep.subr.bf16.mxu1 %v1993_v14 }
 0x376   :  { %1659 = vmatpush1.bf16.msra.mxu0 %v1990_v21  ;;  %1702 = vmatpush1.bf16.msra.mxu1 %v1992_v23 }
 0x377   :  { %1660 = vmatprep.subr.bf16.mxu0 %v1999_v24  ;;  %1703 = vmatprep.subr.bf16.mxu1 %v2001_v25 }
 0x37a   :  { %1661 = vmatpush1.bf16.msra.mxu0 %v1998_v27  ;;  %1704 = vmatpush1.bf16.msra.mxu1 %v2000_v28 }
 0x37b   :  { %1662 = vmatprep.subr.bf16.mxu0 %v2007_v29  ;;  %1705 = vmatprep.subr.bf16.mxu1 %v2009_v32 }
 0x37e   :  { %1663 = vmatpush1.bf16.msra.mxu0 %v2006_v35  ;;  %1706 = vmatpush1.bf16.msra.mxu1 %v2008_v36  ;;  %v1230_v35 = vsub.s32 5, %v2694_v44  ;;  %v1238_v36 = vsub.s32 7, %v2694_v44 }
 0x37f   :  { %1664 = vmatprep.subr.bf16.mxu0 %v2015_v37  ;;  %1707 = vmatprep.subr.bf16.mxu1 %v2017_v38  ;;  %v1227_v37 = vrot.slane %v1206_v61, %v1226_v33  ;;  %v1235_v38 = vrot.slane %v1206_v61, %v1234_v34 }
 0x380   :  { %v1231_v39 = vrot.slane %v1206_v61, %v1230_v35  ;;  %v1239_v42 = vrot.slane %v1206_v61, %v1238_v36 }
 0x382   :  { %1665 = vmatpush1.bf16.msra.mxu0 %v2014_v43  ;;  %1708 = vmatpush1.bf16.msra.mxu1 %v2016_v46 }
 0x383   :  { %1666 = vmatprep.subr.bf16.mxu0 %v2023_v47  ;;  %1709 = vmatprep.subr.bf16.mxu1 %v2025_v48 }
 0x386   :  { %1667 = vmatpush1.bf16.msra.mxu0 %v2022_v53  ;;  %1710 = vmatpush1.bf16.msra.mxu1 %v2024_v54 }
 0x387   :  { %1668 = vmatprep.subr.bf16.mxu0 %v2031_v55  ;;  %1711 = vmatprep.subr.bf16.mxu1 %v2033_v56 }
 0x38a   :  { %1669 = vmatpush1.bf16.msra.mxu0 %v2030_v57  ;;  %1712 = vmatpush1.bf16.msra.mxu1 %v2032_v59 }
 0x38d   :  { %1687 = vmatmul.mubr.bf16.vlgmr.msra.gmra.mrb[16].mxu0 %v2715_v4  ;;  %1730 = vmatmul.mubr.bf16.vlgmr.msra.gmra.mrb[16].mxu1 %v2715_v4 }
 0x440   :  { %v1602_v1 = vpop.f32.mrb[12].mxu0  ;;  %v1645_v2 = vpop.f32.mrb[12].mxu1 }
 0x441   :  { %v1604_v6 = vpop.f32.mrb[13].mxu0  ;;  %v1647_v4 = vpop.f32.mrb[13].mxu1  ;;  %v1603_v9 = vadd.f32 %v1602_v1, %v1211_v63  ;;  %v1646_v10 = vadd.f32 %v1645_v2, %v1219_v0 }
 0x442   :  { %v1606_v7 = vpop.f32.mrb[14].mxu0  ;;  %v1649_v8 = vpop.f32.mrb[14].mxu1  ;;  %v1605_v15 = vadd.f32 %v1604_v6, %v1215_v3  ;;  %v1648_v17 = vadd.f32 %v1647_v4, %v1223_v5 }
 0x443   :  { %v1607_v11 = vadd.f32 %v1606_v7, %v1211_v63  ;;  %v1650_v12 = vadd.f32 %v1649_v8, %v1219_v0  ;;  %v1608_v13 = vpop.f32.mrb[15].mxu0  ;;  %v1651_v14 = vpop.f32.mrb[15].mxu1 }
 0x444   :  { %v1609_v58 = vadd.f32 %v1608_v13, %v1215_v3  ;;  %v1652_v18 = vadd.f32 %v1651_v14, %v1223_v5 }
 0x445   :  { %v1740_v20 = vpack.c.bf16 %v1607_v11, %v1603_v9  ;;  %v1742_v21 = vpack.c.bf16 %v1650_v12, %v1646_v10 }
 0x446   :  { %v1741_v23 = vpack.c.bf16 %v1609_v58, %v1605_v15  ;;  %v1743_v24 = vpack.c.bf16 %v1652_v18, %v1648_v17 }
 0x447   :  { %v2034_v45 = vmul.bf16 3216621497, %v1740_v20  ;;  %v2036_v25 = vmul.bf16 3216621497, %v1742_v21 }
 0x448   :  { %v2035_v16 = vmul.bf16 3216621497, %v1741_v23  ;;  %v2037_v19 = vmul.bf16 3216621497, %v1743_v24 }
 0x449   :  { %2284 = vpow.bf16 %v2034_v45 }
 0x44a   :  { %2286 = vpow.bf16 %v2036_v25 }
 0x44b   :  { %2288 = vpow.bf16 %v2035_v16 }
 0x44c   :  { %2290 = vpow.bf16 %v2037_v19 }
 0x454   :  { %v2285_v22 = vpop.eup %2284 }
 0x455   :  { %v2287_v26 = vpop.eup %2286  ;;  %v1780_v27 = vadd.bf16 1065369472, %v2285_v22 }
 0x456   :  { %v2289_v28 = vpop.eup %2288  ;;  %v1782_v29 = vadd.bf16 1065369472, %v2287_v26 }
 0x457   :  { %v2291_v32 = vpop.eup %2290  ;;  %2292 = vrcp.bf16 %v1780_v27  ;;  %v1781_v30 = vadd.bf16 1065369472, %v2289_v28 }
 0x458   :  { %2294 = vrcp.bf16 %v1782_v29  ;;  %v1783_v31 = vadd.bf16 1065369472, %v2291_v32 }
 0x459   :  { %2296 = vrcp.bf16 %v1781_v30 }
 0x45a   :  { %2298 = vrcp.bf16 %v1783_v31 }
 0x460   :  { %v1688_v40 = vpop.f32.mrb[16].mxu0  ;;  %v1731_v41 = vpop.f32.mrb[16].mxu1 }
 0x461   :  { %v1690_v43 = vpop.f32.mrb[17].mxu0  ;;  %v1733_v46 = vpop.f32.mrb[17].mxu1  ;;  %v1689_v48 = vadd.f32 %v1688_v40, %v1227_v37  ;;  %v1732_v49 = vadd.f32 %v1731_v41, %v1235_v38 }
 0x462   :  { %v2293_v47 = vpop.eup %2292  ;;  %v1692_v50 = vpop.f32.mrb[18].mxu0  ;;  %v1691_v54 = vadd.f32 %v1690_v43, %v1231_v39  ;;  %v1734_v62 = vadd.f32 %v1733_v46, %v1239_v42 }
 0x463   :  { %v1735_v51 = vpop.f32.mrb[18].mxu1  ;;  %v2295_v52 = vpop.eup %2294  ;;  %v1789_v53 = vmul.bf16 1065369472, %v2293_v47  ;;  %v1693_v55 = vadd.f32 %v1692_v50, %v1227_v37 }
 0x464   :  { %v1736_v56 = vadd.f32 %v1735_v51, %v1235_v38  ;;  %v1694_v57 = vpop.f32.mrb[19].mxu0  ;;  %v1737_v44 = vpop.f32.mrb[19].mxu1  ;;  %v1793_v60 = vmul.bf16 1065369472, %v2295_v52 }
 0x465   :  { %v2297_v59 = vpop.eup %2296  ;;  %v1695_v63 = vadd.f32 %v1694_v57, %v1231_v39  ;;  %v1738_v0 = vadd.f32 %v1737_v44, %v1239_v42  ;;  %v1744_v2 = vpack.c.bf16 %v1693_v55, %v1689_v48 }
 0x466   :  { %v2299_v61 = vpop.eup %2298  ;;  %v1791_v1 = vmul.bf16 1065369472, %v2297_v59  ;;  %v1746_v3 = vpack.c.bf16 %v1736_v56, %v1732_v49 }
 0x467   :  { %v1795_v5 = vmul.bf16 1065369472, %v2299_v61  ;;  %v1745_v6 = vpack.c.bf16 %v1695_v63, %v1691_v54  ;;  %v1747_v4 = vpack.c.bf16 %v1738_v0, %v1734_v62  ;;  %v2038_v9 = vmul.bf16 3216621497, %v1744_v2 }
 0x468   :  { %v2042_v7 = vcombine.low %v1789_v53, %v1791_v1  ;;  %v2046_v8 = vcombine.high %v1789_v53, %v1791_v1  ;;  %v2040_v10 = vmul.bf16 3216621497, %v1746_v3 }
 0x469   :  { %v2043_v11 = vcombine.low %v1793_v60, %v1795_v5  ;;  %v2047_v12 = vcombine.high %v1793_v60, %v1795_v5  ;;  %v2039_v13 = vmul.bf16 3216621497, %v1745_v6  ;;  %v2041_v14 = vmul.bf16 3216621497, %v1747_v4 }
 0x46a   :  { %1844 = vst [vmem:[#allocation14] sm:$0xff] %v2042_v7  ;;  %1848 = vst [vmem:[#allocation14 + $0x20] sm:$0xff] %v2046_v8  ;;  %2300 = vpow.bf16 %v2038_v9 }
 0x46b   :  { %1845 = vst [vmem:[#allocation14 + $0x8] sm:$0xff] %v2043_v11  ;;  %1849 = vst [vmem:[#allocation14 + $0x28] sm:$0xff] %v2047_v12  ;;  %2302 = vpow.bf16 %v2040_v10 }
 0x46c   :  { %2304 = vpow.bf16 %v2039_v13 }
 0x46d   :  { %2306 = vpow.bf16 %v2041_v14 }
 0x475   :  { %v2301_v15 = vpop.eup %2300 }
 0x476   :  { %v2303_v17 = vpop.eup %2302  ;;  %v1784_v58 = vadd.bf16 1065369472, %v2301_v15 }
 0x477   :  { %v2305_v18 = vpop.eup %2304  ;;  %v1786_v20 = vadd.bf16 1065369472, %v2303_v17 }
 0x478   :  { %v2307_v21 = vpop.eup %2306  ;;  %2308 = vrcp.bf16 %v1784_v58  ;;  %v1785_v23 = vadd.bf16 1065369472, %v2305_v18 }
 0x479   :  { %2310 = vrcp.bf16 %v1786_v20  ;;  %v1787_v24 = vadd.bf16 1065369472, %v2307_v21 }
 0x47a   :  { %2312 = vrcp.bf16 %v1785_v23 }
 0x47b   :  { %2314 = vrcp.bf16 %v1787_v24 }
 0x483   :  { %v2309_v45 = vpop.eup %2308 }
 0x484   :  { %v2311_v25 = vpop.eup %2310  ;;  %v1797_v16 = vmul.bf16 1065369472, %v2309_v45 }
 0x485   :  { %v2313_v19 = vpop.eup %2312  ;;  %v1801_v22 = vmul.bf16 1065369472, %v2311_v25 }
 0x486   :  { %v2315_v26 = vpop.eup %2314  ;;  %v1799_v27 = vmul.bf16 1065369472, %v2313_v19 }
 0x487   :  { %v1803_v28 = vmul.bf16 1065369472, %v2315_v26 }
 0x488   :  { %v2044_v29 = vcombine.low %v1797_v16, %v1799_v27  ;;  %v2048_v32 = vcombine.high %v1797_v16, %v1799_v27 }
 0x489   :  { %v2045_v30 = vcombine.low %v1801_v22, %v1803_v28  ;;  %v2049_v31 = vcombine.high %v1801_v22, %v1803_v28 }
 0x48a   :  { %1846 = vst [vmem:[#allocation14 + $0x10] sm:$0xff] %v2044_v29  ;;  %1850 = vst [vmem:[#allocation14 + $0x30] sm:$0xff] %v2048_v32 }
 0x48b   :  { %1847 = vst [vmem:[#allocation14 + $0x18] sm:$0xff] %v2045_v30  ;;  %1851 = vst [vmem:[#allocation14 + $0x38] sm:$0xff] %v2049_v31 }
 0x48c   :  { %2481 = shalt.err (!%p2478_p4)
}
 0x48d   :  { %s2482_s3 = scalar_lea.hbm %s2761_s10, 1024 }
 0x48e   :  { %p2483_p5 = scmp.ne.s32.totalorder %s2761_s10, %s2482_s3  ;;  %p2486_p6 = scmp.lt.u32.totalorder %s2482_s3, %s2761_s10 }
 0x490   :  { %p2488_p7 = pnand %p2486_p6, %p2483_p5 }
 0x492   :  { %2491 = shalt.err (!%p2488_p7)
}
 0x493   :  { %1863 = dma.vmem_to_hbm [thread:$0]  %s1858_s27, 1024, %s2761_s10, [#allocation4], %s2510_s7, %s2510_s7, %s2511_s21  }
 0x494   :  { %2500 = dma.done.wait [#allocation4], 1024  }
 0x495   :  { %2501 = vsyncadd [#allocation4], 4294966272 }
 0x496   :  { %1867 = vsyncpa [#allocation3], 1 }
 0x497   :  { %1868 = vsyncpa [#allocation6], 1 }
 0x498   :  { %1869 = vsyncpa [#allocation9], 1 }
 0x499   :  { %1870 = vsyncpa [#allocation12], 1 }
 0x49a   :  { %1871 = vsyncpa [#allocation4], 1 }

</bundles_post_ra>
